<compile_context>
chip_gen: v5e
topology: v5e:2x2
jax: 0.10.0
libtpu: 0.0.40
codegen_flags: <defaults>
</compile_context>

<pallas_src>
import functools

import jax
import jax.numpy as jnp
from jax import lax
from jax.experimental import pallas as pl
from jax.experimental.pallas import tpu as pltpu


# ---------------------------------------------------------------------------
# Fused kernel: Dipole LSTM -> PKG-GAT -> three sigmoid heads
# ---------------------------------------------------------------------------
def fused_kernel(x_ref, feat_ref, pnode_ref, prel_ref,
                 w_ih_ref, w_hh_ref, b_ref, w_ho_ref,
                 w_emb_ref, w_rel_ref, a_src_ref, a_dst_ref,
                 w_top_ref, w_bot_ref,
                 out_ref, attn_ref,
                 *, batch, seq_len, n_paths,
                 path_filtering, joint_impact, threshold,
                 leaky_slope, joint_mix):
    B, S, P = batch, seq_len, n_paths
    H = w_hh_ref.shape[0]
    O = w_top_ref.shape[0]
    E = w_emb_ref.shape[1]
    f32 = jnp.float32

    # -------------------- Dipole LSTM --------------------
    # Input projection hoisted out of the recurrence: one (S*B, I)@(I, 4H) matmul
    # plus a single bias broadcast (x is time-major flattened by the wrapper, so
    # the per-step rows t*B:(t+1)*B are contiguous leading-dim slices).
    pre = jnp.dot(x_ref[...], w_ih_ref[...],
                  preferred_element_type=f32) + b_ref[...]              # (S*B, 4H)
    w_hh = w_hh_ref[...]                                                # (H, 4H)

    h = jnp.zeros((B, H), f32)
    c = jnp.zeros((B, H), f32)
    for t in range(S):  # static unroll; only the recurrent matmul stays in the loop
        gates = pre[t * B:(t + 1) * B, :] + jnp.dot(
            h, w_hh, preferred_element_type=f32)                        # (B, 4H)
        i_g = jax.nn.sigmoid(gates[:, 0:H])          # PyTorch gate order i, f, g, o
        f_g = jax.nn.sigmoid(gates[:, H:2 * H])
        g_g = jnp.tanh(gates[:, 2 * H:3 * H])
        o_g = jax.nn.sigmoid(gates[:, 3 * H:4 * H])
        c = f_g * c + i_g * g_g
        h = o_g * jnp.tanh(c)
    h_time = h                                                          # (B, H)

    # lstm_out and causal-attention query in ONE matmul (w_ho = [w_proj | w_ch]).
    ho = jnp.dot(h_time, w_ho_ref[...], preferred_element_type=f32)     # (B, O+E)
    lstm_out = ho[:, 0:O]                                               # (B, O)
    hc = ho[:, O:O + E]                                                 # (B, E)

    # -------------------- PKG-GAT (all 2-D math) --------------------
    w_emb = w_emb_ref[...]                                              # (I, E)
    a_src = a_src_ref[...]                                              # (1, E)
    a_dst = a_dst_ref[...]                                              # (1, E)

    e_self = jnp.dot(feat_ref[...], w_emb, preferred_element_type=f32)  # (B, E)
    s_dst = jnp.sum(e_self * a_dst, axis=-1, keepdims=True)             # (B, 1)

    # path-node + relation embeddings, flattened over (batch, path)
    p_emb2 = (jnp.dot(pnode_ref[...], w_emb, preferred_element_type=f32)
              + jnp.dot(prel_ref[...], w_rel_ref[...],
                        preferred_element_type=f32))                    # (B*P, E)

    dn_abt = (((1,), (1,)), ((), ()))   # contract last dims: A @ B^T (MXU-native)

    g_i_rows, g_c_rows, p_rows, c_rows = [], [], [], []
    for b in range(B):  # static unroll over the (tiny) batch
        pe_b = p_emb2[b * P:(b + 1) * P, :]                             # (P, E)

        # path (graph) attention: LeakyReLU(a_dst.e_self + a_src.p_emb) -> softmax
        s_src_b = lax.dot_general(a_src, pe_b, dn_abt,
                                  preferred_element_type=f32)           # (1, P)
        s_b = s_dst[b:b + 1, :] + s_src_b
        s_b = jnp.where(s_b > 0, s_b, leaky_slope * s_b)                # LeakyReLU(alpha_CAPF)
        s_b = s_b - jnp.max(s_b, axis=-1, keepdims=True)
        es = jnp.exp(s_b)
        pattn_b = es / jnp.sum(es, axis=-1, keepdims=True)              # (1, P)
        if path_filtering:
            # TODO(synk): if every path falls below threshold this yields all-zero
            # attention; reference fallback behavior is unspecified.
            pattn_b = jnp.where(pattn_b >= threshold, pattn_b, 0.0)
            pattn_b = pattn_b / (jnp.sum(pattn_b, axis=-1, keepdims=True) + 1e-9)

        # causal (temporal) attention driven by the LSTM hidden state
        cs_b = lax.dot_general(hc[b:b + 1, :], pe_b, dn_abt,
                               preferred_element_type=f32)              # (1, P)
        cs_b = cs_b - jnp.max(cs_b, axis=-1, keepdims=True)
        ecs = jnp.exp(cs_b)
        cattn_b = ecs / jnp.sum(ecs, axis=-1, keepdims=True)            # (1, P)

        g_i_rows.append(jnp.dot(pattn_b, pe_b, preferred_element_type=f32))  # (1, E)
        g_c_rows.append(jnp.dot(cattn_b, pe_b, preferred_element_type=f32))  # (1, E)
        p_rows.append(pattn_b)
        c_rows.append(cattn_b)

    g_i = jnp.concatenate(g_i_rows, axis=0)                             # (B, E)
    g_c = jnp.concatenate(g_c_rows, axis=0)                             # (B, E)
    pattn = jnp.concatenate(p_rows, axis=0)                             # (B, P)
    cattn = jnp.concatenate(c_rows, axis=0)                             # (B, P)

    if joint_impact:
        # TODO(synk): joint-impact mixing rule unspecified in the reference;
        #             a fixed convex combination is used (joint_mix).
        g_t = joint_mix * g_i + (1.0 - joint_mix) * g_c
    else:
        g_t = g_i + g_c

    # -------------------- heads (consolidated) --------------------
    # lstm branch computed once with pre-folded weight: w_top = Wlstm @ W_out[:O].
    l = jnp.dot(lstm_out, w_top_ref[...], preferred_element_type=f32)   # (B, O)
    g_stack = jnp.concatenate([g_i, g_c, g_t], axis=0)                  # (3B, E)
    gz = jnp.dot(g_stack, w_bot_ref[...], preferred_element_type=f32)   # (3B, O)
    finals = jax.nn.sigmoid(jnp.concatenate([l, l, l], axis=0) + gz)    # (3B, O)

    # consolidated output slabs (2 stores): [final_i; final_c; final_t; lstm_raw]
    # and [pattn | cattn]
    out_ref[...] = jnp.concatenate([finals, lstm_out], axis=0)          # (4B, O)
    attn_ref[...] = jnp.concatenate([pattn, cattn], axis=-1)            # (B, 2P)


def run_fused(x, feat, pnode, prel, params, *, path_filtering, joint_impact,
              threshold, leaky_slope, joint_mix):
    B, S, I = x.shape
    _, P, R = prel.shape
    O = params['w_top'].shape[0]

    # time-major flatten so the hoisted input projection's per-step rows are
    # contiguous leading-dim slices; path tensors flattened to keep kernel math 2-D
    x_flat = jnp.transpose(x, (1, 0, 2)).reshape(S * B, I)
    pnode_flat = pnode.reshape(B * P, I)
    prel_flat = prel.reshape(B * P, R)

    kern = functools.partial(fused_kernel,
                             batch=B, seq_len=S, n_paths=P,
                             path_filtering=path_filtering,
                             joint_impact=joint_impact,
                             threshold=threshold,
                             leaky_slope=leaky_slope,
                             joint_mix=joint_mix)

    vmem_spec = pl.BlockSpec(memory_space=pltpu.MemorySpace.VMEM)
    out_slab, attn_slab = pl.pallas_call(
        kern,
        out_shape=(jax.ShapeDtypeStruct((4 * B, O), jnp.float32),
                   jax.ShapeDtypeStruct((B, 2 * P), jnp.float32)),
        in_specs=[vmem_spec] * 14,
        out_specs=(vmem_spec, vmem_spec),
    )(x_flat, feat, pnode_flat, prel_flat,
      params['w_ih'], params['w_hh'], params['b'], params['w_ho'],
      params['w_emb'], params['w_rel'], params['a_src'], params['a_dst'],
      params['w_top'], params['w_bot'])
    return out_slab, attn_slab


# ---------------------------------------------------------------------------
# Model wrapper (parameter container + forward orchestration)
# ---------------------------------------------------------------------------
class DiseasePredModel:
    def __init__(self, path_filtering, joint_impact, causal_analysis,
                 input_dim, output_dim, hidden_dim, embed_dim, n_rel,
                 threshold, alpha_CAPF, key, joint_mix=0.5):
        self.path_filtering = path_filtering
        self.joint_impact = joint_impact
        self.causal_analysis = causal_analysis
        self.input_dim = input_dim
        self.output_dim = output_dim
        self.hidden_dim = hidden_dim
        self.embed_dim = embed_dim
        self.threshold = threshold
        # alpha_CAPF is the LeakyReLU negative slope of the GAT attention
        # (GATModel(alpha=alpha_CAPF) in the reference).
        self.leaky_slope = alpha_CAPF
        self.joint_mix = joint_mix

        ks = jax.random.split(key, 10)

        def init(k, shape, fan_in):
            return (jax.random.normal(k, shape, jnp.float32)
                    * (1.0 / jnp.sqrt(jnp.float32(fan_in))))

        I, H, O, E, R = input_dim, hidden_dim, output_dim, embed_dim, n_rel
        p = {
            # Dipole LSTM
            'w_ih':  init(ks[0], (I, 4 * H), I),
            'w_hh':  init(ks[1], (H, 4 * H), H),
            'b':     jnp.zeros((1, 4 * H), jnp.float32),
            'w_proj': init(ks[2], (H, O), H),
            # Wlstm (Linear(O, O, bias=False))
            'w_lstm': init(ks[3], (O, O), O),
            # GAT
            'w_emb': init(ks[4], (I, E), I),
            'w_rel': init(ks[5], (R, E), R),
            'a_src': init(ks[6], (1, E), E),
            'a_dst': init(ks[7], (1, E), E),
            'w_ch':  init(ks[8], (H, E), H),
            # out_activation: Linear(O + E, O, bias=False) + Sigmoid
            'w_out': init(ks[9], (O + E, O), O + E),
        }
        # --- offline weight folds (free, removes matmuls from the kernel) ---
        # lstm_out / causal-query fused projection: [w_proj | w_ch]  (H, O+E)
        p['w_ho'] = jnp.concatenate([p['w_proj'], p['w_ch']], axis=1)
        # head lstm branch: (lstm_out @ Wlstm) @ W_out[:O] == lstm_out @ w_top
        p['w_top'] = jnp.dot(p['w_lstm'], p['w_out'][0:O, :])
        p['w_bot'] = p['w_out'][O:, :]
        self.params = p

    def forward(self, feature_index, feat_index, path_index, path_node,
                path_relation, only_dipole, p):
        # dropout prob `p` unused (eval-mode semantics); path_index unused (see TODO)
        B = feature_index.shape[0]
        P = path_node.shape[1]

        out_slab, attn_slab = run_fused(
            feature_index, feat_index, path_node, path_relation, self.params,
            path_filtering=self.path_filtering,
            joint_impact=self.joint_impact,
            threshold=self.threshold,
            leaky_slope=self.leaky_slope,
            joint_mix=self.joint_mix)

        lstm_raw = out_slab[3 * B:4 * B]
        if only_dipole:
            # reference code applies out_activation directly to lstm_out
            # (dimension mismatch in original module); raw LSTM output returned.
            return lstm_raw

        final_i = out_slab[0:B]
        final_c = out_slab[B:2 * B]
        final_t = out_slab[2 * B:3 * B]
        pattn = attn_slab[:, 0:P]
        cattn = attn_slab[:, P:2 * P]

        if self.causal_analysis:
            return final_i, final_c, final_t, pattn, cattn
        else:
            return final_t


# ---------------------------------------------------------------------------
if __name__ == "__main__":
    B, S = 2, 8            # batch, visits
    INPUT_DIM = 32         # medical-code vocabulary (multi-hot)
    HIDDEN_DIM = 32
    OUTPUT_DIM = 16
    EMBED_DIM = 16
    N_PATHS = 4
    N_REL = 4

    key = jax.random.PRNGKey(0)
    k_model, k1, k2, k3, k4 = jax.random.split(key, 5)

    model = DiseasePredModel(
        path_filtering=True, joint_impact=True, causal_analysis=True,
        input_dim=INPUT_DIM, output_dim=OUTPUT_DIM, hidden_dim=HIDDEN_DIM,
        embed_dim=EMBED_DIM, n_rel=N_REL, threshold=0.05, alpha_CAPF=0.2,
        key=k_model)

    # multi-hot EHR records / features / path nodes; one-hot path relations
    feature_index = jax.random.bernoulli(k1, 0.2, (B, S, INPUT_DIM)).astype(jnp.float32)
    feat_index = jax.random.bernoulli(k2, 0.2, (B, INPUT_DIM)).astype(jnp.float32)
    path_node = jax.random.bernoulli(k3, 0.2, (B, N_PATHS, INPUT_DIM)).astype(jnp.float32)
    rel_ids = jax.random.randint(k4, (B, N_PATHS), 0, N_REL)
    path_relation = jax.nn.one_hot(rel_ids, N_REL, dtype=jnp.float32)
    path_index = jnp.arange(N_PATHS, dtype=jnp.int32)  # unused placeholder

    final_i, final_c, final_t, pattn, cattn = model.forward(
        feature_index, feat_index, path_index, path_node, path_relation,
        only_dipole=False, p=0.0)

    jax.block_until_ready((final_i, final_c, final_t, pattn, cattn))

    assert final_i.shape == (B, OUTPUT_DIM)
    assert final_c.shape == (B, OUTPUT_DIM)
    assert final_t.shape == (B, OUTPUT_DIM)
    assert pattn.shape == (B, N_PATHS)
    assert cattn.shape == (B, N_PATHS)
    assert bool(jnp.all(jnp.isfinite(final_t)))
    assert bool(jnp.all(jnp.isfinite(pattn)))
    print("KERNEL_OK")
</pallas_src>

<mosaic_0001>
module attributes {stable_mosaic.version = 11 : i64} {
  func.func @fused_kernel(%arg0: memref<16x32xf32, #tpu.memory_space<vmem>>, %arg1: memref<2x32xf32, #tpu.memory_space<vmem>>, %arg2: memref<8x32xf32, #tpu.memory_space<vmem>>, %arg3: memref<8x4xf32, #tpu.memory_space<vmem>>, %arg4: memref<32x128xf32, #tpu.memory_space<vmem>>, %arg5: memref<32x128xf32, #tpu.memory_space<vmem>>, %arg6: memref<1x128xf32, #tpu.memory_space<vmem>>, %arg7: memref<32x32xf32, #tpu.memory_space<vmem>>, %arg8: memref<32x16xf32, #tpu.memory_space<vmem>>, %arg9: memref<4x16xf32, #tpu.memory_space<vmem>>, %arg10: memref<1x16xf32, #tpu.memory_space<vmem>>, %arg11: memref<1x16xf32, #tpu.memory_space<vmem>>, %arg12: memref<16x16xf32, #tpu.memory_space<vmem>>, %arg13: memref<16x16xf32, #tpu.memory_space<vmem>>, %arg14: memref<8x16xf32, #tpu.memory_space<vmem>>, %arg15: memref<2x8xf32, #tpu.memory_space<vmem>>) attributes {dimension_semantics = [], scalar_prefetch = 0 : i64, scratch_operands = 0 : i64, tpu.core_type = #tpu.core_type<tc>} {
    %c0 = arith.constant 0 : index
    %c0_0 = arith.constant 0 : index
    %0 = vector.load %arg0[%c0, %c0_0] : memref<16x32xf32, #tpu.memory_space<vmem>>, vector<16x32xf32>
    %c0_1 = arith.constant 0 : index
    %c0_2 = arith.constant 0 : index
    %1 = vector.load %arg4[%c0_1, %c0_2] : memref<32x128xf32, #tpu.memory_space<vmem>>, vector<32x128xf32>
    %cst = arith.constant dense<0.000000e+00> : vector<16x128xf32>
    %2 = tpu.matmul %0, %1, %cst {dimension_numbers = #tpu.dot_dimension_numbers<[1], [0], [0], [1], [0, 0, 1, 1], [], []>} : vector<16x32xf32>, vector<32x128xf32>, vector<16x128xf32> -> vector<16x128xf32>
    %c0_3 = arith.constant 0 : index
    %c0_4 = arith.constant 0 : index
    %3 = vector.load %arg6[%c0_3, %c0_4] : memref<1x128xf32, #tpu.memory_space<vmem>>, vector<1x128xf32>
    %4 = vector.broadcast %3 : vector<1x128xf32> to vector<16x128xf32>
    %5 = arith.addf %2, %4 : vector<16x128xf32>
    %c0_5 = arith.constant 0 : index
    %c0_6 = arith.constant 0 : index
    %6 = vector.load %arg5[%c0_5, %c0_6] : memref<32x128xf32, #tpu.memory_space<vmem>>, vector<32x128xf32>
    %cst_7 = arith.constant 0.000000e+00 : f32
    %7 = vector.broadcast %cst_7 : f32 to vector<2x32xf32>
    %cst_8 = arith.constant 0.000000e+00 : f32
    %8 = vector.broadcast %cst_8 : f32 to vector<2x32xf32>
    %9 = vector.extract_strided_slice %5 {offsets = [0, 0], sizes = [2, 128], strides = [1, 1]} : vector<16x128xf32> to vector<2x128xf32>
    %cst_9 = arith.constant dense<0.000000e+00> : vector<2x128xf32>
    %10 = tpu.matmul %7, %6, %cst_9 {dimension_numbers = #tpu.dot_dimension_numbers<[1], [0], [0], [1], [0, 0, 1, 1], [], []>} : vector<2x32xf32>, vector<32x128xf32>, vector<2x128xf32> -> vector<2x128xf32>
    %11 = arith.addf %9, %10 : vector<2x128xf32>
    %12 = vector.extract_strided_slice %11 {offsets = [0, 0], sizes = [2, 32], strides = [1, 1]} : vector<2x128xf32> to vector<2x32xf32>
    %13 = arith.negf %12 : vector<2x32xf32>
    %14 = math.exp %13 : vector<2x32xf32>
    %cst_10 = arith.constant 1.000000e+00 : f32
    %15 = vector.broadcast %cst_10 : f32 to vector<2x32xf32>
    %16 = arith.addf %15, %14 : vector<2x32xf32>
    %17 = arith.divf %15, %16 : vector<2x32xf32>
    %18 = vector.extract_strided_slice %11 {offsets = [0, 32], sizes = [2, 32], strides = [1, 1]} : vector<2x128xf32> to vector<2x32xf32>
    %19 = arith.negf %18 : vector<2x32xf32>
    %20 = math.exp %19 : vector<2x32xf32>
    %cst_11 = arith.constant 1.000000e+00 : f32
    %21 = vector.broadcast %cst_11 : f32 to vector<2x32xf32>
    %22 = arith.addf %21, %20 : vector<2x32xf32>
    %23 = arith.divf %21, %22 : vector<2x32xf32>
    %24 = vector.extract_strided_slice %11 {offsets = [0, 64], sizes = [2, 32], strides = [1, 1]} : vector<2x128xf32> to vector<2x32xf32>
    %25 = math.tanh %24 : vector<2x32xf32>
    %26 = vector.extract_strided_slice %11 {offsets = [0, 96], sizes = [2, 32], strides = [1, 1]} : vector<2x128xf32> to vector<2x32xf32>
    %27 = arith.negf %26 : vector<2x32xf32>
    %28 = math.exp %27 : vector<2x32xf32>
    %cst_12 = arith.constant 1.000000e+00 : f32
    %29 = vector.broadcast %cst_12 : f32 to vector<2x32xf32>
    %30 = arith.addf %29, %28 : vector<2x32xf32>
    %31 = arith.divf %29, %30 : vector<2x32xf32>
    %32 = arith.mulf %23, %8 : vector<2x32xf32>
    %33 = arith.mulf %17, %25 : vector<2x32xf32>
    %34 = arith.addf %32, %33 : vector<2x32xf32>
    %35 = math.tanh %34 : vector<2x32xf32>
    %36 = arith.mulf %31, %35 : vector<2x32xf32>
    %37 = vector.extract_strided_slice %5 {offsets = [2, 0], sizes = [2, 128], strides = [1, 1]} : vector<16x128xf32> to vector<2x128xf32>
    %cst_13 = arith.constant dense<0.000000e+00> : vector<2x128xf32>
    %38 = tpu.matmul %36, %6, %cst_13 {dimension_numbers = #tpu.dot_dimension_numbers<[1], [0], [0], [1], [0, 0, 1, 1], [], []>} : vector<2x32xf32>, vector<32x128xf32>, vector<2x128xf32> -> vector<2x128xf32>
    %39 = arith.addf %37, %38 : vector<2x128xf32>
    %40 = vector.extract_strided_slice %39 {offsets = [0, 0], sizes = [2, 32], strides = [1, 1]} : vector<2x128xf32> to vector<2x32xf32>
    %41 = arith.negf %40 : vector<2x32xf32>
    %42 = math.exp %41 : vector<2x32xf32>
    %cst_14 = arith.constant 1.000000e+00 : f32
    %43 = vector.broadcast %cst_14 : f32 to vector<2x32xf32>
    %44 = arith.addf %43, %42 : vector<2x32xf32>
    %45 = arith.divf %43, %44 : vector<2x32xf32>
    %46 = vector.extract_strided_slice %39 {offsets = [0, 32], sizes = [2, 32], strides = [1, 1]} : vector<2x128xf32> to vector<2x32xf32>
    %47 = arith.negf %46 : vector<2x32xf32>
    %48 = math.exp %47 : vector<2x32xf32>
    %cst_15 = arith.constant 1.000000e+00 : f32
    %49 = vector.broadcast %cst_15 : f32 to vector<2x32xf32>
    %50 = arith.addf %49, %48 : vector<2x32xf32>
    %51 = arith.divf %49, %50 : vector<2x32xf32>
    %52 = vector.extract_strided_slice %39 {offsets = [0, 64], sizes = [2, 32], strides = [1, 1]} : vector<2x128xf32> to vector<2x32xf32>
    %53 = math.tanh %52 : vector<2x32xf32>
    %54 = vector.extract_strided_slice %39 {offsets = [0, 96], sizes = [2, 32], strides = [1, 1]} : vector<2x128xf32> to vector<2x32xf32>
    %55 = arith.negf %54 : vector<2x32xf32>
    %56 = math.exp %55 : vector<2x32xf32>
    %cst_16 = arith.constant 1.000000e+00 : f32
    %57 = vector.broadcast %cst_16 : f32 to vector<2x32xf32>
    %58 = arith.addf %57, %56 : vector<2x32xf32>
    %59 = arith.divf %57, %58 : vector<2x32xf32>
    %60 = arith.mulf %51, %34 : vector<2x32xf32>
    %61 = arith.mulf %45, %53 : vector<2x32xf32>
    %62 = arith.addf %60, %61 : vector<2x32xf32>
    %63 = math.tanh %62 : vector<2x32xf32>
    %64 = arith.mulf %59, %63 : vector<2x32xf32>
    %65 = vector.extract_strided_slice %5 {offsets = [4, 0], sizes = [2, 128], strides = [1, 1]} : vector<16x128xf32> to vector<2x128xf32>
    %cst_17 = arith.constant dense<0.000000e+00> : vector<2x128xf32>
    %66 = tpu.matmul %64, %6, %cst_17 {dimension_numbers = #tpu.dot_dimension_numbers<[1], [0], [0], [1], [0, 0, 1, 1], [], []>} : vector<2x32xf32>, vector<32x128xf32>, vector<2x128xf32> -> vector<2x128xf32>
    %67 = arith.addf %65, %66 : vector<2x128xf32>
    %68 = vector.extract_strided_slice %67 {offsets = [0, 0], sizes = [2, 32], strides = [1, 1]} : vector<2x128xf32> to vector<2x32xf32>
    %69 = arith.negf %68 : vector<2x32xf32>
    %70 = math.exp %69 : vector<2x32xf32>
    %cst_18 = arith.constant 1.000000e+00 : f32
    %71 = vector.broadcast %cst_18 : f32 to vector<2x32xf32>
    %72 = arith.addf %71, %70 : vector<2x32xf32>
    %73 = arith.divf %71, %72 : vector<2x32xf32>
    %74 = vector.extract_strided_slice %67 {offsets = [0, 32], sizes = [2, 32], strides = [1, 1]} : vector<2x128xf32> to vector<2x32xf32>
    %75 = arith.negf %74 : vector<2x32xf32>
    %76 = math.exp %75 : vector<2x32xf32>
    %cst_19 = arith.constant 1.000000e+00 : f32
    %77 = vector.broadcast %cst_19 : f32 to vector<2x32xf32>
    %78 = arith.addf %77, %76 : vector<2x32xf32>
    %79 = arith.divf %77, %78 : vector<2x32xf32>
    %80 = vector.extract_strided_slice %67 {offsets = [0, 64], sizes = [2, 32], strides = [1, 1]} : vector<2x128xf32> to vector<2x32xf32>
    %81 = math.tanh %80 : vector<2x32xf32>
    %82 = vector.extract_strided_slice %67 {offsets = [0, 96], sizes = [2, 32], strides = [1, 1]} : vector<2x128xf32> to vector<2x32xf32>
    %83 = arith.negf %82 : vector<2x32xf32>
    %84 = math.exp %83 : vector<2x32xf32>
    %cst_20 = arith.constant 1.000000e+00 : f32
    %85 = vector.broadcast %cst_20 : f32 to vector<2x32xf32>
    %86 = arith.addf %85, %84 : vector<2x32xf32>
    %87 = arith.divf %85, %86 : vector<2x32xf32>
    %88 = arith.mulf %79, %62 : vector<2x32xf32>
    %89 = arith.mulf %73, %81 : vector<2x32xf32>
    %90 = arith.addf %88, %89 : vector<2x32xf32>
    %91 = math.tanh %90 : vector<2x32xf32>
    %92 = arith.mulf %87, %91 : vector<2x32xf32>
    %93 = vector.extract_strided_slice %5 {offsets = [6, 0], sizes = [2, 128], strides = [1, 1]} : vector<16x128xf32> to vector<2x128xf32>
    %cst_21 = arith.constant dense<0.000000e+00> : vector<2x128xf32>
    %94 = tpu.matmul %92, %6, %cst_21 {dimension_numbers = #tpu.dot_dimension_numbers<[1], [0], [0], [1], [0, 0, 1, 1], [], []>} : vector<2x32xf32>, vector<32x128xf32>, vector<2x128xf32> -> vector<2x128xf32>
    %95 = arith.addf %93, %94 : vector<2x128xf32>
    %96 = vector.extract_strided_slice %95 {offsets = [0, 0], sizes = [2, 32], strides = [1, 1]} : vector<2x128xf32> to vector<2x32xf32>
    %97 = arith.negf %96 : vector<2x32xf32>
    %98 = math.exp %97 : vector<2x32xf32>
    %cst_22 = arith.constant 1.000000e+00 : f32
    %99 = vector.broadcast %cst_22 : f32 to vector<2x32xf32>
    %100 = arith.addf %99, %98 : vector<2x32xf32>
    %101 = arith.divf %99, %100 : vector<2x32xf32>
    %102 = vector.extract_strided_slice %95 {offsets = [0, 32], sizes = [2, 32], strides = [1, 1]} : vector<2x128xf32> to vector<2x32xf32>
    %103 = arith.negf %102 : vector<2x32xf32>
    %104 = math.exp %103 : vector<2x32xf32>
    %cst_23 = arith.constant 1.000000e+00 : f32
    %105 = vector.broadcast %cst_23 : f32 to vector<2x32xf32>
    %106 = arith.addf %105, %104 : vector<2x32xf32>
    %107 = arith.divf %105, %106 : vector<2x32xf32>
    %108 = vector.extract_strided_slice %95 {offsets = [0, 64], sizes = [2, 32], strides = [1, 1]} : vector<2x128xf32> to vector<2x32xf32>
    %109 = math.tanh %108 : vector<2x32xf32>
    %110 = vector.extract_strided_slice %95 {offsets = [0, 96], sizes = [2, 32], strides = [1, 1]} : vector<2x128xf32> to vector<2x32xf32>
    %111 = arith.negf %110 : vector<2x32xf32>
    %112 = math.exp %111 : vector<2x32xf32>
    %cst_24 = arith.constant 1.000000e+00 : f32
    %113 = vector.broadcast %cst_24 : f32 to vector<2x32xf32>
    %114 = arith.addf %113, %112 : vector<2x32xf32>
    %115 = arith.divf %113, %114 : vector<2x32xf32>
    %116 = arith.mulf %107, %90 : vector<2x32xf32>
    %117 = arith.mulf %101, %109 : vector<2x32xf32>
    %118 = arith.addf %116, %117 : vector<2x32xf32>
    %119 = math.tanh %118 : vector<2x32xf32>
    %120 = arith.mulf %115, %119 : vector<2x32xf32>
    %121 = vector.extract_strided_slice %5 {offsets = [8, 0], sizes = [2, 128], strides = [1, 1]} : vector<16x128xf32> to vector<2x128xf32>
    %cst_25 = arith.constant dense<0.000000e+00> : vector<2x128xf32>
    %122 = tpu.matmul %120, %6, %cst_25 {dimension_numbers = #tpu.dot_dimension_numbers<[1], [0], [0], [1], [0, 0, 1, 1], [], []>} : vector<2x32xf32>, vector<32x128xf32>, vector<2x128xf32> -> vector<2x128xf32>
    %123 = arith.addf %121, %122 : vector<2x128xf32>
    %124 = vector.extract_strided_slice %123 {offsets = [0, 0], sizes = [2, 32], strides = [1, 1]} : vector<2x128xf32> to vector<2x32xf32>
    %125 = arith.negf %124 : vector<2x32xf32>
    %126 = math.exp %125 : vector<2x32xf32>
    %cst_26 = arith.constant 1.000000e+00 : f32
    %127 = vector.broadcast %cst_26 : f32 to vector<2x32xf32>
    %128 = arith.addf %127, %126 : vector<2x32xf32>
    %129 = arith.divf %127, %128 : vector<2x32xf32>
    %130 = vector.extract_strided_slice %123 {offsets = [0, 32], sizes = [2, 32], strides = [1, 1]} : vector<2x128xf32> to vector<2x32xf32>
    %131 = arith.negf %130 : vector<2x32xf32>
    %132 = math.exp %131 : vector<2x32xf32>
    %cst_27 = arith.constant 1.000000e+00 : f32
    %133 = vector.broadcast %cst_27 : f32 to vector<2x32xf32>
    %134 = arith.addf %133, %132 : vector<2x32xf32>
    %135 = arith.divf %133, %134 : vector<2x32xf32>
    %136 = vector.extract_strided_slice %123 {offsets = [0, 64], sizes = [2, 32], strides = [1, 1]} : vector<2x128xf32> to vector<2x32xf32>
    %137 = math.tanh %136 : vector<2x32xf32>
    %138 = vector.extract_strided_slice %123 {offsets = [0, 96], sizes = [2, 32], strides = [1, 1]} : vector<2x128xf32> to vector<2x32xf32>
    %139 = arith.negf %138 : vector<2x32xf32>
    %140 = math.exp %139 : vector<2x32xf32>
    %cst_28 = arith.constant 1.000000e+00 : f32
    %141 = vector.broadcast %cst_28 : f32 to vector<2x32xf32>
    %142 = arith.addf %141, %140 : vector<2x32xf32>
    %143 = arith.divf %141, %142 : vector<2x32xf32>
    %144 = arith.mulf %135, %118 : vector<2x32xf32>
    %145 = arith.mulf %129, %137 : vector<2x32xf32>
    %146 = arith.addf %144, %145 : vector<2x32xf32>
    %147 = math.tanh %146 : vector<2x32xf32>
    %148 = arith.mulf %143, %147 : vector<2x32xf32>
    %149 = vector.extract_strided_slice %5 {offsets = [10, 0], sizes = [2, 128], strides = [1, 1]} : vector<16x128xf32> to vector<2x128xf32>
    %cst_29 = arith.constant dense<0.000000e+00> : vector<2x128xf32>
    %150 = tpu.matmul %148, %6, %cst_29 {dimension_numbers = #tpu.dot_dimension_numbers<[1], [0], [0], [1], [0, 0, 1, 1], [], []>} : vector<2x32xf32>, vector<32x128xf32>, vector<2x128xf32> -> vector<2x128xf32>
    %151 = arith.addf %149, %150 : vector<2x128xf32>
    %152 = vector.extract_strided_slice %151 {offsets = [0, 0], sizes = [2, 32], strides = [1, 1]} : vector<2x128xf32> to vector<2x32xf32>
    %153 = arith.negf %152 : vector<2x32xf32>
    %154 = math.exp %153 : vector<2x32xf32>
    %cst_30 = arith.constant 1.000000e+00 : f32
    %155 = vector.broadcast %cst_30 : f32 to vector<2x32xf32>
    %156 = arith.addf %155, %154 : vector<2x32xf32>
    %157 = arith.divf %155, %156 : vector<2x32xf32>
    %158 = vector.extract_strided_slice %151 {offsets = [0, 32], sizes = [2, 32], strides = [1, 1]} : vector<2x128xf32> to vector<2x32xf32>
    %159 = arith.negf %158 : vector<2x32xf32>
    %160 = math.exp %159 : vector<2x32xf32>
    %cst_31 = arith.constant 1.000000e+00 : f32
    %161 = vector.broadcast %cst_31 : f32 to vector<2x32xf32>
    %162 = arith.addf %161, %160 : vector<2x32xf32>
    %163 = arith.divf %161, %162 : vector<2x32xf32>
    %164 = vector.extract_strided_slice %151 {offsets = [0, 64], sizes = [2, 32], strides = [1, 1]} : vector<2x128xf32> to vector<2x32xf32>
    %165 = math.tanh %164 : vector<2x32xf32>
    %166 = vector.extract_strided_slice %151 {offsets = [0, 96], sizes = [2, 32], strides = [1, 1]} : vector<2x128xf32> to vector<2x32xf32>
    %167 = arith.negf %166 : vector<2x32xf32>
    %168 = math.exp %167 : vector<2x32xf32>
    %cst_32 = arith.constant 1.000000e+00 : f32
    %169 = vector.broadcast %cst_32 : f32 to vector<2x32xf32>
    %170 = arith.addf %169, %168 : vector<2x32xf32>
    %171 = arith.divf %169, %170 : vector<2x32xf32>
    %172 = arith.mulf %163, %146 : vector<2x32xf32>
    %173 = arith.mulf %157, %165 : vector<2x32xf32>
    %174 = arith.addf %172, %173 : vector<2x32xf32>
    %175 = math.tanh %174 : vector<2x32xf32>
    %176 = arith.mulf %171, %175 : vector<2x32xf32>
    %177 = vector.extract_strided_slice %5 {offsets = [12, 0], sizes = [2, 128], strides = [1, 1]} : vector<16x128xf32> to vector<2x128xf32>
    %cst_33 = arith.constant dense<0.000000e+00> : vector<2x128xf32>
    %178 = tpu.matmul %176, %6, %cst_33 {dimension_numbers = #tpu.dot_dimension_numbers<[1], [0], [0], [1], [0, 0, 1, 1], [], []>} : vector<2x32xf32>, vector<32x128xf32>, vector<2x128xf32> -> vector<2x128xf32>
    %179 = arith.addf %177, %178 : vector<2x128xf32>
    %180 = vector.extract_strided_slice %179 {offsets = [0, 0], sizes = [2, 32], strides = [1, 1]} : vector<2x128xf32> to vector<2x32xf32>
    %181 = arith.negf %180 : vector<2x32xf32>
    %182 = math.exp %181 : vector<2x32xf32>
    %cst_34 = arith.constant 1.000000e+00 : f32
    %183 = vector.broadcast %cst_34 : f32 to vector<2x32xf32>
    %184 = arith.addf %183, %182 : vector<2x32xf32>
    %185 = arith.divf %183, %184 : vector<2x32xf32>
    %186 = vector.extract_strided_slice %179 {offsets = [0, 32], sizes = [2, 32], strides = [1, 1]} : vector<2x128xf32> to vector<2x32xf32>
    %187 = arith.negf %186 : vector<2x32xf32>
    %188 = math.exp %187 : vector<2x32xf32>
    %cst_35 = arith.constant 1.000000e+00 : f32
    %189 = vector.broadcast %cst_35 : f32 to vector<2x32xf32>
    %190 = arith.addf %189, %188 : vector<2x32xf32>
    %191 = arith.divf %189, %190 : vector<2x32xf32>
    %192 = vector.extract_strided_slice %179 {offsets = [0, 64], sizes = [2, 32], strides = [1, 1]} : vector<2x128xf32> to vector<2x32xf32>
    %193 = math.tanh %192 : vector<2x32xf32>
    %194 = vector.extract_strided_slice %179 {offsets = [0, 96], sizes = [2, 32], strides = [1, 1]} : vector<2x128xf32> to vector<2x32xf32>
    %195 = arith.negf %194 : vector<2x32xf32>
    %196 = math.exp %195 : vector<2x32xf32>
    %cst_36 = arith.constant 1.000000e+00 : f32
    %197 = vector.broadcast %cst_36 : f32 to vector<2x32xf32>
    %198 = arith.addf %197, %196 : vector<2x32xf32>
    %199 = arith.divf %197, %198 : vector<2x32xf32>
    %200 = arith.mulf %191, %174 : vector<2x32xf32>
    %201 = arith.mulf %185, %193 : vector<2x32xf32>
    %202 = arith.addf %200, %201 : vector<2x32xf32>
    %203 = math.tanh %202 : vector<2x32xf32>
    %204 = arith.mulf %199, %203 : vector<2x32xf32>
    %205 = vector.extract_strided_slice %5 {offsets = [14, 0], sizes = [2, 128], strides = [1, 1]} : vector<16x128xf32> to vector<2x128xf32>
    %cst_37 = arith.constant dense<0.000000e+00> : vector<2x128xf32>
    %206 = tpu.matmul %204, %6, %cst_37 {dimension_numbers = #tpu.dot_dimension_numbers<[1], [0], [0], [1], [0, 0, 1, 1], [], []>} : vector<2x32xf32>, vector<32x128xf32>, vector<2x128xf32> -> vector<2x128xf32>
    %207 = arith.addf %205, %206 : vector<2x128xf32>
    %208 = vector.extract_strided_slice %207 {offsets = [0, 0], sizes = [2, 32], strides = [1, 1]} : vector<2x128xf32> to vector<2x32xf32>
    %209 = arith.negf %208 : vector<2x32xf32>
    %210 = math.exp %209 : vector<2x32xf32>
    %cst_38 = arith.constant 1.000000e+00 : f32
    %211 = vector.broadcast %cst_38 : f32 to vector<2x32xf32>
    %212 = arith.addf %211, %210 : vector<2x32xf32>
    %213 = arith.divf %211, %212 : vector<2x32xf32>
    %214 = vector.extract_strided_slice %207 {offsets = [0, 32], sizes = [2, 32], strides = [1, 1]} : vector<2x128xf32> to vector<2x32xf32>
    %215 = arith.negf %214 : vector<2x32xf32>
    %216 = math.exp %215 : vector<2x32xf32>
    %cst_39 = arith.constant 1.000000e+00 : f32
    %217 = vector.broadcast %cst_39 : f32 to vector<2x32xf32>
    %218 = arith.addf %217, %216 : vector<2x32xf32>
    %219 = arith.divf %217, %218 : vector<2x32xf32>
    %220 = vector.extract_strided_slice %207 {offsets = [0, 64], sizes = [2, 32], strides = [1, 1]} : vector<2x128xf32> to vector<2x32xf32>
    %221 = math.tanh %220 : vector<2x32xf32>
    %222 = vector.extract_strided_slice %207 {offsets = [0, 96], sizes = [2, 32], strides = [1, 1]} : vector<2x128xf32> to vector<2x32xf32>
    %223 = arith.negf %222 : vector<2x32xf32>
    %224 = math.exp %223 : vector<2x32xf32>
    %cst_40 = arith.constant 1.000000e+00 : f32
    %225 = vector.broadcast %cst_40 : f32 to vector<2x32xf32>
    %226 = arith.addf %225, %224 : vector<2x32xf32>
    %227 = arith.divf %225, %226 : vector<2x32xf32>
    %228 = arith.mulf %219, %202 : vector<2x32xf32>
    %229 = arith.mulf %213, %221 : vector<2x32xf32>
    %230 = arith.addf %228, %229 : vector<2x32xf32>
    %231 = math.tanh %230 : vector<2x32xf32>
    %232 = arith.mulf %227, %231 : vector<2x32xf32>
    %c0_41 = arith.constant 0 : index
    %c0_42 = arith.constant 0 : index
    %233 = vector.load %arg7[%c0_41, %c0_42] : memref<32x32xf32, #tpu.memory_space<vmem>>, vector<32x32xf32>
    %cst_43 = arith.constant dense<0.000000e+00> : vector<2x32xf32>
    %234 = tpu.matmul %232, %233, %cst_43 {dimension_numbers = #tpu.dot_dimension_numbers<[1], [0], [0], [1], [0, 0, 1, 1], [], []>} : vector<2x32xf32>, vector<32x32xf32>, vector<2x32xf32> -> vector<2x32xf32>
    %235 = vector.extract_strided_slice %234 {offsets = [0, 0], sizes = [2, 16], strides = [1, 1]} : vector<2x32xf32> to vector<2x16xf32>
    %236 = vector.extract_strided_slice %234 {offsets = [0, 16], sizes = [2, 16], strides = [1, 1]} : vector<2x32xf32> to vector<2x16xf32>
    %c0_44 = arith.constant 0 : index
    %c0_45 = arith.constant 0 : index
    %237 = vector.load %arg8[%c0_44, %c0_45] : memref<32x16xf32, #tpu.memory_space<vmem>>, vector<32x16xf32>
    %c0_46 = arith.constant 0 : index
    %c0_47 = arith.constant 0 : index
    %238 = vector.load %arg10[%c0_46, %c0_47] : memref<1x16xf32, #tpu.memory_space<vmem>>, vector<1x16xf32>
    %c0_48 = arith.constant 0 : index
    %c0_49 = arith.constant 0 : index
    %239 = vector.load %arg11[%c0_48, %c0_49] : memref<1x16xf32, #tpu.memory_space<vmem>>, vector<1x16xf32>
    %c0_50 = arith.constant 0 : index
    %c0_51 = arith.constant 0 : index
    %240 = vector.load %arg1[%c0_50, %c0_51] : memref<2x32xf32, #tpu.memory_space<vmem>>, vector<2x32xf32>
    %cst_52 = arith.constant dense<0.000000e+00> : vector<2x16xf32>
    %241 = tpu.matmul %240, %237, %cst_52 {dimension_numbers = #tpu.dot_dimension_numbers<[1], [0], [0], [1], [0, 0, 1, 1], [], []>} : vector<2x32xf32>, vector<32x16xf32>, vector<2x16xf32> -> vector<2x16xf32>
    %242 = vector.broadcast %239 : vector<1x16xf32> to vector<2x16xf32>
    %243 = arith.mulf %241, %242 : vector<2x16xf32>
    %cst_53 = arith.constant dense<0.000000e+00> : vector<2xf32>
    %244 = vector.multi_reduction <add>, %243, %cst_53 [1] : vector<2x16xf32> to vector<2xf32>
    %245 = vector.shape_cast %244 : vector<2xf32> to vector<2x1xf32>
    %c0_54 = arith.constant 0 : index
    %c0_55 = arith.constant 0 : index
    %246 = vector.load %arg2[%c0_54, %c0_55] : memref<8x32xf32, #tpu.memory_space<vmem>>, vector<8x32xf32>
    %cst_56 = arith.constant dense<0.000000e+00> : vector<8x16xf32>
    %247 = tpu.matmul %246, %237, %cst_56 {dimension_numbers = #tpu.dot_dimension_numbers<[1], [0], [0], [1], [0, 0, 1, 1], [], []>} : vector<8x32xf32>, vector<32x16xf32>, vector<8x16xf32> -> vector<8x16xf32>
    %c0_57 = arith.constant 0 : index
    %c0_58 = arith.constant 0 : index
    %248 = vector.load %arg3[%c0_57, %c0_58] : memref<8x4xf32, #tpu.memory_space<vmem>>, vector<8x4xf32>
    %c0_59 = arith.constant 0 : index
    %c0_60 = arith.constant 0 : index
    %249 = vector.load %arg9[%c0_59, %c0_60] : memref<4x16xf32, #tpu.memory_space<vmem>>, vector<4x16xf32>
    %cst_61 = arith.constant dense<0.000000e+00> : vector<8x16xf32>
    %250 = tpu.matmul %248, %249, %cst_61 {dimension_numbers = #tpu.dot_dimension_numbers<[1], [0], [0], [1], [0, 0, 1, 1], [], []>} : vector<8x4xf32>, vector<4x16xf32>, vector<8x16xf32> -> vector<8x16xf32>
    %251 = arith.addf %247, %250 : vector<8x16xf32>
    %252 = vector.extract_strided_slice %251 {offsets = [0, 0], sizes = [4, 16], strides = [1, 1]} : vector<8x16xf32> to vector<4x16xf32>
    %cst_62 = arith.constant dense<0.000000e+00> : vector<1x4xf32>
    %253 = tpu.matmul %238, %252, %cst_62 {dimension_numbers = #tpu.dot_dimension_numbers<[1], [1], [0], [0], [0, 0, 1, 0], [], []>} : vector<1x16xf32>, vector<4x16xf32>, vector<1x4xf32> -> vector<1x4xf32>
    %254 = vector.extract_strided_slice %245 {offsets = [0, 0], sizes = [1, 1], strides = [1, 1]} : vector<2x1xf32> to vector<1x1xf32>
    %255 = vector.broadcast %254 : vector<1x1xf32> to vector<1x4xf32>
    %256 = arith.addf %255, %253 : vector<1x4xf32>
    %cst_63 = arith.constant 0.000000e+00 : f32
    %257 = vector.broadcast %cst_63 : f32 to vector<1x4xf32>
    %258 = arith.cmpf ogt, %256, %257 : vector<1x4xf32>
    %cst_64 = arith.constant 2.000000e-01 : f32
    %259 = vector.broadcast %cst_64 : f32 to vector<1x4xf32>
    %260 = arith.mulf %259, %256 : vector<1x4xf32>
    %261 = arith.select %258, %256, %260 : vector<1x4xi1>, vector<1x4xf32>
    %cst_65 = arith.constant dense<0xFF800000> : vector<1xf32>
    %262 = vector.multi_reduction <maximumf>, %261, %cst_65 [1] : vector<1x4xf32> to vector<1xf32>
    %263 = vector.shape_cast %262 : vector<1xf32> to vector<1x1xf32>
    %264 = vector.broadcast %263 : vector<1x1xf32> to vector<1x4xf32>
    %265 = arith.subf %261, %264 : vector<1x4xf32>
    %266 = math.exp %265 : vector<1x4xf32>
    %cst_66 = arith.constant dense<0.000000e+00> : vector<1xf32>
    %267 = vector.multi_reduction <add>, %266, %cst_66 [1] : vector<1x4xf32> to vector<1xf32>
    %268 = vector.shape_cast %267 : vector<1xf32> to vector<1x1xf32>
    %269 = vector.broadcast %268 : vector<1x1xf32> to vector<1x4xf32>
    %270 = arith.divf %266, %269 : vector<1x4xf32>
    %cst_67 = arith.constant 5.000000e-02 : f32
    %271 = vector.broadcast %cst_67 : f32 to vector<1x4xf32>
    %272 = arith.cmpf oge, %270, %271 : vector<1x4xf32>
    %cst_68 = arith.constant 0.000000e+00 : f32
    %273 = vector.broadcast %cst_68 : f32 to vector<1x4xf32>
    %274 = arith.select %272, %270, %273 : vector<1x4xi1>, vector<1x4xf32>
    %cst_69 = arith.constant dense<0.000000e+00> : vector<1xf32>
    %275 = vector.multi_reduction <add>, %274, %cst_69 [1] : vector<1x4xf32> to vector<1xf32>
    %276 = vector.shape_cast %275 : vector<1xf32> to vector<1x1xf32>
    %cst_70 = arith.constant 9.99999971E-10 : f32
    %277 = vector.broadcast %cst_70 : f32 to vector<1x1xf32>
    %278 = arith.addf %276, %277 : vector<1x1xf32>
    %279 = vector.broadcast %278 : vector<1x1xf32> to vector<1x4xf32>
    %280 = arith.divf %274, %279 : vector<1x4xf32>
    %281 = vector.extract_strided_slice %236 {offsets = [0, 0], sizes = [1, 16], strides = [1, 1]} : vector<2x16xf32> to vector<1x16xf32>
    %cst_71 = arith.constant dense<0.000000e+00> : vector<1x4xf32>
    %282 = tpu.matmul %281, %252, %cst_71 {dimension_numbers = #tpu.dot_dimension_numbers<[1], [1], [0], [0], [0, 0, 1, 0], [], []>} : vector<1x16xf32>, vector<4x16xf32>, vector<1x4xf32> -> vector<1x4xf32>
    %cst_72 = arith.constant dense<0xFF800000> : vector<1xf32>
    %283 = vector.multi_reduction <maximumf>, %282, %cst_72 [1] : vector<1x4xf32> to vector<1xf32>
    %284 = vector.shape_cast %283 : vector<1xf32> to vector<1x1xf32>
    %285 = vector.broadcast %284 : vector<1x1xf32> to vector<1x4xf32>
    %286 = arith.subf %282, %285 : vector<1x4xf32>
    %287 = math.exp %286 : vector<1x4xf32>
    %cst_73 = arith.constant dense<0.000000e+00> : vector<1xf32>
    %288 = vector.multi_reduction <add>, %287, %cst_73 [1] : vector<1x4xf32> to vector<1xf32>
    %289 = vector.shape_cast %288 : vector<1xf32> to vector<1x1xf32>
    %290 = vector.broadcast %289 : vector<1x1xf32> to vector<1x4xf32>
    %291 = arith.divf %287, %290 : vector<1x4xf32>
    %cst_74 = arith.constant dense<0.000000e+00> : vector<1x16xf32>
    %292 = tpu.matmul %280, %252, %cst_74 {dimension_numbers = #tpu.dot_dimension_numbers<[1], [0], [0], [1], [0, 0, 1, 1], [], []>} : vector<1x4xf32>, vector<4x16xf32>, vector<1x16xf32> -> vector<1x16xf32>
    %cst_75 = arith.constant dense<0.000000e+00> : vector<1x16xf32>
    %293 = tpu.matmul %291, %252, %cst_75 {dimension_numbers = #tpu.dot_dimension_numbers<[1], [0], [0], [1], [0, 0, 1, 1], [], []>} : vector<1x4xf32>, vector<4x16xf32>, vector<1x16xf32> -> vector<1x16xf32>
    %294 = vector.extract_strided_slice %251 {offsets = [4, 0], sizes = [4, 16], strides = [1, 1]} : vector<8x16xf32> to vector<4x16xf32>
    %cst_76 = arith.constant dense<0.000000e+00> : vector<1x4xf32>
    %295 = tpu.matmul %238, %294, %cst_76 {dimension_numbers = #tpu.dot_dimension_numbers<[1], [1], [0], [0], [0, 0, 1, 0], [], []>} : vector<1x16xf32>, vector<4x16xf32>, vector<1x4xf32> -> vector<1x4xf32>
    %296 = vector.extract_strided_slice %245 {offsets = [1, 0], sizes = [1, 1], strides = [1, 1]} : vector<2x1xf32> to vector<1x1xf32>
    %297 = vector.broadcast %296 : vector<1x1xf32> to vector<1x4xf32>
    %298 = arith.addf %297, %295 : vector<1x4xf32>
    %cst_77 = arith.constant 0.000000e+00 : f32
    %299 = vector.broadcast %cst_77 : f32 to vector<1x4xf32>
    %300 = arith.cmpf ogt, %298, %299 : vector<1x4xf32>
    %cst_78 = arith.constant 2.000000e-01 : f32
    %301 = vector.broadcast %cst_78 : f32 to vector<1x4xf32>
    %302 = arith.mulf %301, %298 : vector<1x4xf32>
    %303 = arith.select %300, %298, %302 : vector<1x4xi1>, vector<1x4xf32>
    %cst_79 = arith.constant dense<0xFF800000> : vector<1xf32>
    %304 = vector.multi_reduction <maximumf>, %303, %cst_79 [1] : vector<1x4xf32> to vector<1xf32>
    %305 = vector.shape_cast %304 : vector<1xf32> to vector<1x1xf32>
    %306 = vector.broadcast %305 : vector<1x1xf32> to vector<1x4xf32>
    %307 = arith.subf %303, %306 : vector<1x4xf32>
    %308 = math.exp %307 : vector<1x4xf32>
    %cst_80 = arith.constant dense<0.000000e+00> : vector<1xf32>
    %309 = vector.multi_reduction <add>, %308, %cst_80 [1] : vector<1x4xf32> to vector<1xf32>
    %310 = vector.shape_cast %309 : vector<1xf32> to vector<1x1xf32>
    %311 = vector.broadcast %310 : vector<1x1xf32> to vector<1x4xf32>
    %312 = arith.divf %308, %311 : vector<1x4xf32>
    %cst_81 = arith.constant 5.000000e-02 : f32
    %313 = vector.broadcast %cst_81 : f32 to vector<1x4xf32>
    %314 = arith.cmpf oge, %312, %313 : vector<1x4xf32>
    %cst_82 = arith.constant 0.000000e+00 : f32
    %315 = vector.broadcast %cst_82 : f32 to vector<1x4xf32>
    %316 = arith.select %314, %312, %315 : vector<1x4xi1>, vector<1x4xf32>
    %cst_83 = arith.constant dense<0.000000e+00> : vector<1xf32>
    %317 = vector.multi_reduction <add>, %316, %cst_83 [1] : vector<1x4xf32> to vector<1xf32>
    %318 = vector.shape_cast %317 : vector<1xf32> to vector<1x1xf32>
    %cst_84 = arith.constant 9.99999971E-10 : f32
    %319 = vector.broadcast %cst_84 : f32 to vector<1x1xf32>
    %320 = arith.addf %318, %319 : vector<1x1xf32>
    %321 = vector.broadcast %320 : vector<1x1xf32> to vector<1x4xf32>
    %322 = arith.divf %316, %321 : vector<1x4xf32>
    %323 = vector.extract_strided_slice %236 {offsets = [1, 0], sizes = [1, 16], strides = [1, 1]} : vector<2x16xf32> to vector<1x16xf32>
    %cst_85 = arith.constant dense<0.000000e+00> : vector<1x4xf32>
    %324 = tpu.matmul %323, %294, %cst_85 {dimension_numbers = #tpu.dot_dimension_numbers<[1], [1], [0], [0], [0, 0, 1, 0], [], []>} : vector<1x16xf32>, vector<4x16xf32>, vector<1x4xf32> -> vector<1x4xf32>
    %cst_86 = arith.constant dense<0xFF800000> : vector<1xf32>
    %325 = vector.multi_reduction <maximumf>, %324, %cst_86 [1] : vector<1x4xf32> to vector<1xf32>
    %326 = vector.shape_cast %325 : vector<1xf32> to vector<1x1xf32>
    %327 = vector.broadcast %326 : vector<1x1xf32> to vector<1x4xf32>
    %328 = arith.subf %324, %327 : vector<1x4xf32>
    %329 = math.exp %328 : vector<1x4xf32>
    %cst_87 = arith.constant dense<0.000000e+00> : vector<1xf32>
    %330 = vector.multi_reduction <add>, %329, %cst_87 [1] : vector<1x4xf32> to vector<1xf32>
    %331 = vector.shape_cast %330 : vector<1xf32> to vector<1x1xf32>
    %332 = vector.broadcast %331 : vector<1x1xf32> to vector<1x4xf32>
    %333 = arith.divf %329, %332 : vector<1x4xf32>
    %cst_88 = arith.constant dense<0.000000e+00> : vector<1x16xf32>
    %334 = tpu.matmul %322, %294, %cst_88 {dimension_numbers = #tpu.dot_dimension_numbers<[1], [0], [0], [1], [0, 0, 1, 1], [], []>} : vector<1x4xf32>, vector<4x16xf32>, vector<1x16xf32> -> vector<1x16xf32>
    %cst_89 = arith.constant dense<0.000000e+00> : vector<1x16xf32>
    %335 = tpu.matmul %333, %294, %cst_89 {dimension_numbers = #tpu.dot_dimension_numbers<[1], [0], [0], [1], [0, 0, 1, 1], [], []>} : vector<1x4xf32>, vector<4x16xf32>, vector<1x16xf32> -> vector<1x16xf32>
    %336 = tpu.concatenate %292, %334 in 0 : vector<1x16xf32>, vector<1x16xf32> -> vector<2x16xf32>
    %337 = tpu.concatenate %293, %335 in 0 : vector<1x16xf32>, vector<1x16xf32> -> vector<2x16xf32>
    %338 = tpu.concatenate %280, %322 in 0 : vector<1x4xf32>, vector<1x4xf32> -> vector<2x4xf32>
    %339 = tpu.concatenate %291, %333 in 0 : vector<1x4xf32>, vector<1x4xf32> -> vector<2x4xf32>
    %cst_90 = arith.constant 5.000000e-01 : f32
    %340 = vector.broadcast %cst_90 : f32 to vector<2x16xf32>
    %341 = arith.mulf %340, %336 : vector<2x16xf32>
    %cst_91 = arith.constant 5.000000e-01 : f32
    %342 = vector.broadcast %cst_91 : f32 to vector<2x16xf32>
    %343 = arith.mulf %342, %337 : vector<2x16xf32>
    %344 = arith.addf %341, %343 : vector<2x16xf32>
    %c0_92 = arith.constant 0 : index
    %c0_93 = arith.constant 0 : index
    %345 = vector.load %arg12[%c0_92, %c0_93] : memref<16x16xf32, #tpu.memory_space<vmem>>, vector<16x16xf32>
    %cst_94 = arith.constant dense<0.000000e+00> : vector<2x16xf32>
    %346 = tpu.matmul %235, %345, %cst_94 {dimension_numbers = #tpu.dot_dimension_numbers<[1], [0], [0], [1], [0, 0, 1, 1], [], []>} : vector<2x16xf32>, vector<16x16xf32>, vector<2x16xf32> -> vector<2x16xf32>
    %347 = tpu.concatenate %336, %337, %344 in 0 : vector<2x16xf32>, vector<2x16xf32>, vector<2x16xf32> -> vector<6x16xf32>
    %c0_95 = arith.constant 0 : index
    %c0_96 = arith.constant 0 : index
    %348 = vector.load %arg13[%c0_95, %c0_96] : memref<16x16xf32, #tpu.memory_space<vmem>>, vector<16x16xf32>
    %cst_97 = arith.constant dense<0.000000e+00> : vector<6x16xf32>
    %349 = tpu.matmul %347, %348, %cst_97 {dimension_numbers = #tpu.dot_dimension_numbers<[1], [0], [0], [1], [0, 0, 1, 1], [], []>} : vector<6x16xf32>, vector<16x16xf32>, vector<6x16xf32> -> vector<6x16xf32>
    %350 = tpu.concatenate %346, %346, %346 in 0 : vector<2x16xf32>, vector<2x16xf32>, vector<2x16xf32> -> vector<6x16xf32>
    %351 = arith.addf %350, %349 : vector<6x16xf32>
    %352 = arith.negf %351 : vector<6x16xf32>
    %353 = math.exp %352 : vector<6x16xf32>
    %cst_98 = arith.constant 1.000000e+00 : f32
    %354 = vector.broadcast %cst_98 : f32 to vector<6x16xf32>
    %355 = arith.addf %354, %353 : vector<6x16xf32>
    %356 = arith.divf %354, %355 : vector<6x16xf32>
    %357 = tpu.concatenate %356, %235 in 0 : vector<6x16xf32>, vector<2x16xf32> -> vector<8x16xf32>
    %c0_99 = arith.constant 0 : index
    %c0_100 = arith.constant 0 : index
    %358 = vector.load %arg14[%c0_99, %c0_100] : memref<8x16xf32, #tpu.memory_space<vmem>>, vector<8x16xf32>
    tpu.vector_store %arg14[%c0_99, %c0_100], %357 {strides = array<i32>} : memref<8x16xf32, #tpu.memory_space<vmem>>, vector<8x16xf32>,
    %359 = tpu.concatenate %338, %339 in 1 : vector<2x4xf32>, vector<2x4xf32> -> vector<2x8xf32>
    %c0_101 = arith.constant 0 : index
    %c0_102 = arith.constant 0 : index
    %360 = vector.load %arg15[%c0_101, %c0_102] : memref<2x8xf32, #tpu.memory_space<vmem>>, vector<2x8xf32>
    tpu.vector_store %arg15[%c0_101, %c0_102], %359 {strides = array<i32>} : memref<2x8xf32, #tpu.memory_space<vmem>>, vector<2x8xf32>,
    return
  }
}

</mosaic_0001>

<bundles_post_ra>
// kernel: tpu_custom_call.1
= control target key start
LH: loop header
LB: loop body
LE: loop exit
PB: predicated region body
PF: predicated region fallthrough
CT: control target
= control target key end

     0   :  { %21 = vsyncpa [#allocation3], 0  ;;  %s2015_s0 = inlined_call_operand.vmem [shape: f32[16,32], index: 0, kind: input, shape index: {}]   ;;  %s2016_s1 = inlined_call_operand.hbm [shape: f32[2,32], index: 1, kind: input, shape index: {}]   ;;  %s2017_s2 = inlined_call_operand.hbm [shape: f32[8,32], index: 2, kind: input, shape index: {}]   ;;  %s2018_s3 = inlined_call_operand.vmem [shape: f32[8,4], index: 3, kind: input, shape index: {}]   ;;  %s2019_s4 = inlined_call_operand.vmem [shape: f32[32,128], index: 4, kind: input, shape index: {}]   ;;  %s2020_s5 = inlined_call_operand.hbm [shape: f32[32,128], index: 5, kind: input, shape index: {}]   ;;  %s2021_s6 = inlined_call_operand.hbm [shape: f32[1,128], index: 6, kind: input, shape index: {}]   ;;  %s2022_s7 = inlined_call_operand.hbm [shape: f32[32,32], index: 7, kind: input, shape index: {}]   ;;  %s2023_s8 = inlined_call_operand.vmem [shape: f32[32,16], index: 8, kind: input, shape index: {}]   ;;  %s2024_s9 = inlined_call_operand.vmem [shape: f32[4,16], index: 9, kind: input, shape index: {}]   ;;  %s2025_s10 = inlined_call_operand.vmem [shape: f32[1,16], index: 10, kind: input, shape index: {}]   ;;  %s2026_s11 = inlined_call_operand.vmem [shape: f32[1,16], index: 11, kind: input, shape index: {}]   ;;  %s2027_s12 = inlined_call_operand.hbm [shape: f32[16,16], index: 12, kind: input, shape index: {}]   ;;  %s2028_s13 = inlined_call_operand.hbm [shape: f32[16,16], index: 13, kind: input, shape index: {}]   ;;  %s2029_s14 = inlined_call_operand.hbm [shape: f32[8,16], index: 14, kind: output, shape index: {0}]   ;;  %s2030_s15 = inlined_call_operand.hbm [shape: f32[2,8], index: 15, kind: output, shape index: {1}]  }
   0x1   :  { %22 = vsyncpa [#allocation6], 0 }
   0x2   :  { %23 = vsyncpa [#allocation9], 0 }
   0x3   :  { %24 = vsyncpa [#allocation12], 0 }
   0x4   :  { %25 = vsyncpa [#allocation4], 0  ;;  %s45_s20 = sshll.u32 %s2017_s2, 4  ;;  %s46_s20 = int_to_ptr.hbm [resolvable:$true] %s45_s20 }
   0x5   :  { %26 = vsyncpa [#allocation16], 0  ;;  %s1738_s21 = smov [#allocation5]   ;;  %s73_s25 = sshll.u32 %s2021_s6, 4  ;;  %s74_s25 = int_to_ptr.hbm [resolvable:$true] %s73_s25 }
   0x6   :  { %s47_s22 = sshll.u32 %s1738_s21, 4  ;;  %s1739_s26 = smov [#allocation8]   ;;  %s48_s22 = int_to_ptr.vmem [resolvable:$true] %s47_s22 }
   0x7   :  { %50 = dma.hbm_to_vmem [thread:$0]  %s46_s20, 128, %s48_s22, [#allocation6]  }
   0x8   :  { %s75_s27 = sshll.u32 %s1739_s26, 4  ;;  %s104_s30 = sshll.u32 %s2027_s12, 4  ;;  %s76_s27 = int_to_ptr.vmem [resolvable:$true] %s75_s27  ;;  %s105_s30 = int_to_ptr.hbm [resolvable:$true] %s104_s30 }
   0x9   :  { %78 = dma.hbm_to_vmem [thread:$0]  %s74_s25, 16, %s76_s27, [#allocation9]  }
   0xa   :  { %s1740_s2 = smov [#allocation11]   ;;  %s34_s19 = sshll.u32 %s2016_s1, 4  ;;  %s35_s19 = int_to_ptr.hbm [resolvable:$true] %s34_s19 }
   0xb   :  { %s106_s16 = sshll.u32 %s1740_s2, 4  ;;  %s1741_s21 = smov 128   ;;  %s107_s16 = int_to_ptr.vmem [resolvable:$true] %s106_s16 }
   0xc   :  { %s1742_s6 = smov 8   ;;  %s1743_s20 = smov [#allocation2]  }
   0xd   :  { %112 = dma.hbm_to_vmem [thread:$0]  %s105_s30, 256, %s107_s16, [#allocation12], %s1741_s21, %s1741_s21, %s1742_s6  }
   0xe   :  { %s36_s22 = sshll.u32 %s1743_s20, 4  ;;  %s59_s25 = sshll.u32 %s2020_s5, 4  ;;  %s37_s22 = int_to_ptr.vmem [resolvable:$true] %s36_s22  ;;  %s60_s25 = int_to_ptr.hbm [resolvable:$true] %s59_s25 }
   0xf   :  { %39 = dma.hbm_to_vmem [thread:$0]  %s35_s19, 32, %s37_s22, [#allocation3]  }
  0x10   :  { %s83_s27 = sshll.u32 %s2022_s7, 4  ;;  %s1744_s28 = smov [#allocation7]   ;;  %s84_s27 = int_to_ptr.hbm [resolvable:$true] %s83_s27 }
  0x11   :  { %s61_s29 = sshll.u32 %s1744_s28, 4  ;;  %s1745_s1 = smov [#allocation10]   ;;  %s62_s29 = int_to_ptr.vmem [resolvable:$true] %s61_s29 }
  0x12   :  { %67 = dma.hbm_to_vmem [thread:$0]  %s60_s25, 512, %s62_s29, [#allocation6], %s1741_s21, %s1741_s21, %s1742_s6  }
  0x13   :  { %s85_s30 = sshll.u32 %s1745_s1, 4  ;;  %s117_s17 = sshll.u32 %s2028_s13, 4  ;;  %s86_s30 = int_to_ptr.vmem [resolvable:$true] %s85_s30  ;;  %s118_s17 = int_to_ptr.hbm [resolvable:$true] %s117_s17 }
  0x14   :  { %91 = dma.hbm_to_vmem [thread:$0]  %s84_s27, 512, %s86_s30, [#allocation9], %s1741_s21, %s1741_s21, %s1742_s6  }
  0x15   :  { %s1746_s5 = smov [#allocation13]  }
  0x16   :  { %s119_s18 = sshll.u32 %s1746_s5, 4  ;;  %s120_s18 = int_to_ptr.vmem [resolvable:$true] %s119_s18 }
  0x17   :  { %125 = dma.hbm_to_vmem [thread:$0]  %s118_s17, 256, %s120_s18, [#allocation12], %s1741_s21, %s1741_s21, %s1742_s6  }
  0x18   :  { %1726 = dma.done.wait [#allocation3], 32  }
  0x19   :  { %1727 = vsyncadd [#allocation3], 4294967264 }
  0x1a   :  { %1728 = dma.done.wait [#allocation6], 640  }
  0x1b   :  { %1729 = vsyncadd [#allocation6], 4294966656 }
  0x1c   :  { %1730 = dma.done.wait [#allocation9], 528  }
  0x1d   :  { %1731 = vsyncadd [#allocation9], 4294966768 }
  0x1e   :  { %1732 = dma.done.wait [#allocation12], 512  }
  0x1f   :  { %1733 = vsyncadd [#allocation12], 4294966784  ;;  %v159_v0 = vld [vmem:[%s2019_s4 + $0x18] sm:$0xff]  ;;  %v158_v1 = vld [vmem:[%s2019_s4 + $0x10] sm:$0xff]  ;;  %vm164_vm0 = vcmask 261120   ;;  %v1747_v9 = vmov 0.0  }
  0x20   :  { %v197_v2 = vld [vmem:[#allocation7 + $0x18] sm:$0xff]  ;;  %183 = vmatpush.msra.mxu0 %v159_v0  ;;  %v196_v3 = vld [vmem:[#allocation7 + $0x10] sm:$0xff]  ;;  %v195_v5 = vld [vmem:[#allocation7 + $0x8] sm:$0xff]  ;;  %s1749_s12 = smov 32   ;;  %s1750_s13 = smov 112  }
  0x21   :  { %213 = vmatpush.msra.mxu1 %v197_v2  ;;  %v157_v4 = vld [vmem:[%s2019_s4 + $0x8] sm:$0xff]  ;;  %276 = vmatpush.msra.mxu2 %v197_v2  ;;  %v156_v6 = vld [vmem:[%s2019_s4] sm:$0xff]  ;;  %s1748_s4 = smov 64   ;;  %s1752_s20 = smov [#allocation15]  }
  0x22   :  { %346 = vmatpush.msra.mxu3 %v197_v2  ;;  %184 = vmatpush.msra.mxu0 %v158_v1  ;;  %v194_v7 = vld [vmem:[#allocation7] sm:$0xff]  ;;  %v154_v8 = vld [vmem:[%s2015_s0] sm:$0xff]  ;;  %s1343_s21 = sshll.u32 %s1752_s20, 4  ;;  %s1345_s23 = sshll.u32 %s2030_s15, 4  ;;  %s1344_s21 = int_to_ptr.vmem [resolvable:$true] %s1343_s21  ;;  %s1346_s23 = int_to_ptr.hbm [resolvable:$true] %s1345_s23 }
  0x23   :  { %214 = vmatpush.msra.mxu1 %v196_v3  ;;  %277 = vmatpush.msra.mxu2 %v196_v3  ;;  %v1871_v10 = vld [vmem:[#allocation8] ss:$0 sm:$0xff]  ;;  %s1753_s15 = smov [#allocation14]  }
  0x24   :  { %347 = vmatpush.msra.mxu3 %v196_v3  ;;  %185 = vmatpush.msra.mxu0 %v157_v4  ;;  %s1332_s24 = sshll.u32 %s1753_s15, 4  ;;  %s1333_s24 = int_to_ptr.vmem [resolvable:$true] %s1332_s24 }
  0x25   :  { %215 = vmatpush.msra.mxu1 %v195_v5  ;;  %278 = vmatpush.msra.mxu2 %v195_v5 }
  0x26   :  { %348 = vmatpush.msra.mxu3 %v195_v5  ;;  %186 = vmatpush.msra.mxu0 %v156_v6 }
  0x27   :  { %216 = vmatpush.msra.mxu1 %v194_v7  ;;  %1363 = vmatmul.msk.f32.vlgmr.msra.gmra.mxu0 %vm164_vm0, %v154_v8 }
  0x28   :  { %217 = vmatmul.f32.vlgmr.msra.gmra.mxu1 %v1747_v9  ;;  %279 = vmatpush.msra.mxu2 %v194_v7 }
  0x29   :  { %349 = vmatpush.msra.mxu3 %v194_v7  ;;  %416 = vmatpush.msrb.mxu1 %v197_v2 }
  0x2a   :  { %486 = vmatpush.msrb.mxu2 %v197_v2  ;;  %622 = vmatpush.msrb.mxu0 %v197_v2 }
  0x2b   :  { %552 = vmatpush.msrb.mxu3 %v197_v2  ;;  %417 = vmatpush.msrb.mxu1 %v196_v3 }
  0x2c   :  { %487 = vmatpush.msrb.mxu2 %v196_v3  ;;  %623 = vmatpush.msrb.mxu0 %v196_v3 }
  0x2d   :  { %553 = vmatpush.msrb.mxu3 %v196_v3  ;;  %418 = vmatpush.msrb.mxu1 %v195_v5 }
  0x2e   :  { %488 = vmatpush.msrb.mxu2 %v195_v5  ;;  %624 = vmatpush.msrb.mxu0 %v195_v5 }
  0x2f   :  { %554 = vmatpush.msrb.mxu3 %v195_v5  ;;  %419 = vmatpush.msrb.mxu1 %v194_v7 }
  0x30   :  { %489 = vmatpush.msrb.mxu2 %v194_v7  ;;  %625 = vmatpush.msrb.mxu0 %v194_v7 }
  0x31   :  { %555 = vmatpush.msrb.mxu3 %v194_v7  ;;  %692 = vmatpush.msra.mxu1 %v197_v2 }
  0x33   :  { %693 = vmatpush.msra.mxu1 %v196_v3 }
  0x35   :  { %694 = vmatpush.msra.mxu1 %v195_v5 }
  0x37   :  { %695 = vmatpush.msra.mxu1 %v194_v7 }
  0xa4   :  { %v188_v11 = vpop.f32.mrf.mxu0 }
  0xa5   :  { %v218_v12 = vpop.f32.mrf.mxu1  ;;  %v1874_v13 = vadd.f32 %v1871_v10, %v188_v11 }
  0xa7   :  { %v221_v14 = vadd.f32 %v218_v12, %v1874_v13 }
  0xa9   :  { %1422 = vtanh.f32 %v221_v14  ;;  %v1365_v16 = vmul.f32 -1.442695, %v221_v14 }
  0xab   :  { %1424 = vpow2.f32 %v1365_v16 }
  0xaf   :  { %v1423_v15 = vpop.eup %1422 }
  0xb0   :  { %244 = vrot.lane.b32.xlu0 %v1423_v15, %s1748_s4 }
  0xb1   :  { %v1425_v17 = vpop.eup %1424 }
  0xb2   :  { %v225_v18 = vadd.f32 1.0, %v1425_v17 }
  0xb4   :  { %1426 = vrcp.f32 %v225_v18  ;;  %v237_v24 = vand.u32 2147483648, %v225_v18  ;;  %vm231_vm2 = vweird.f32 %v225_v18  ;;  %v235_v25 = vand.u32 2147483647, %v225_v18 }
  0xb6   :  { %v238_v27 = vor.u32 1.1754944e-38, %v237_v24  ;;  %vm236_vm4 = vcmp.eq.f32.partialorder %v235_v25, 8.507059e+37 }
  0xba   :  { %v1427_v19 = vpop.eup %1426 }
  0xbb   :  { %v227_v20 = vmul.f32 %v1427_v19, %v225_v18  ;;  %vm232_vm1 = vweird.f32 %v1427_v19 }
  0xbc   :  { %vm233_vm3 = vmor %vm231_vm2, %vm232_vm1 }
  0xbd   :  { %v228_v21 = vsub.f32 1.0, %v227_v20 }
  0xbf   :  { %v229_v22 = vmul.f32 %v1427_v19, %v228_v21 }
  0xc1   :  { %v230_v23 = vadd.f32 %v1427_v19, %v229_v22 }
  0xc3   :  { %v234_v26 = vsel %vm233_vm3, %v1427_v19, %v230_v23 }
  0xc4   :  { %v239_v29 = vsel %vm236_vm4, %v238_v27, %v234_v26 }
  0xc5   :  { %v242_v31 = vmul.f32 0.0, %v239_v29 }
 0x122   :  { %v245_v28 = vpop.permute.xlu0 %244 }
 0x123   :  { %v247_v30 = vmul.f32 %v245_v28, %v239_v29 }
 0x125   :  { %249 = vrot.lane.b32.xlu0 %v247_v30, %s1749_s12 }
 0x197   :  { %v250_v32 = vpop.permute.xlu0 %249 }
 0x198   :  { %v252_v33 = vadd.f32 %v250_v32, %v242_v31 }
 0x19a   :  { %1428 = vtanh.f32 %v252_v33  ;;  %v309_v57 = vrot.slane %v252_v33, 6 }
 0x1a0   :  { %v1429_v34 = vpop.eup %1428 }
 0x1a1   :  { %255 = vrot.lane.b32.xlu1 %v1429_v34, %s1748_s4 }
 0x213   :  { %v256_v35 = vpop.permute.xlu1 %255 }
 0x214   :  { %v258_v36 = vmul.f32 %v256_v35, %v239_v29 }
 0x216   :  { %260 = vrot.lane.b32.xlu1 %v258_v36, %s1749_s12 }
 0x288   :  { %v261_v37 = vpop.permute.xlu1 %260 }
 0x289   :  { %1366 = vmatmul.msk.f32.vlgmr.msra.gmra.mxu2 %vm164_vm0, %v261_v37 }
 0x30c   :  { %v281_v38 = vpop.f32.mrf.mxu2 }
 0x30d   :  { %v285_v39 = vrot.slane %v281_v38, 6 }
 0x30f   :  { %v287_v40 = vadd.f32 %v285_v39, %v1874_v13 }
 0x311   :  { %1430 = vtanh.f32 %v287_v40  ;;  %v1367_v42 = vmul.f32 -1.442695, %v287_v40 }
 0x313   :  { %1432 = vpow2.f32 %v1367_v42 }
 0x317   :  { %v1431_v41 = vpop.eup %1430 }
 0x318   :  { %313 = vrot.lane.b32.xlu2 %v1431_v41, %s1748_s4 }
 0x319   :  { %v1433_v43 = vpop.eup %1432 }
 0x31a   :  { %v291_v44 = vadd.f32 1.0, %v1433_v43 }
 0x31c   :  { %1434 = vrcp.f32 %v291_v44  ;;  %v303_v50 = vand.u32 2147483648, %v291_v44  ;;  %vm297_vm6 = vweird.f32 %v291_v44  ;;  %v301_v51 = vand.u32 2147483647, %v291_v44 }
 0x31e   :  { %v304_v53 = vor.u32 1.1754944e-38, %v303_v50  ;;  %vm302_vm8 = vcmp.eq.f32.partialorder %v301_v51, 8.507059e+37 }
 0x322   :  { %v1435_v45 = vpop.eup %1434 }
 0x323   :  { %v293_v46 = vmul.f32 %v1435_v45, %v291_v44  ;;  %vm298_vm5 = vweird.f32 %v1435_v45 }
 0x324   :  { %vm299_vm7 = vmor %vm297_vm6, %vm298_vm5 }
 0x325   :  { %v294_v47 = vsub.f32 1.0, %v293_v46 }
 0x327   :  { %v295_v48 = vmul.f32 %v1435_v45, %v294_v47 }
 0x329   :  { %v296_v49 = vadd.f32 %v1435_v45, %v295_v48 }
 0x32b   :  { %v300_v52 = vsel %vm299_vm7, %v1435_v45, %v296_v49 }
 0x32c   :  { %v305_v55 = vsel %vm302_vm8, %v304_v53, %v300_v52 }
 0x32d   :  { %v311_v58 = vmul.f32 %v309_v57, %v305_v55 }
 0x372   :  { %v314_v54 = vpop.permute.xlu2 %313 }
 0x373   :  { %v316_v56 = vmul.f32 %v314_v54, %v305_v55 }
 0x375   :  { %318 = vrot.lane.b32.xlu2 %v316_v56, %s1749_s12 }
 0x3cf   :  { %v319_v59 = vpop.permute.xlu2 %318 }
 0x3d0   :  { %v321_v60 = vadd.f32 %v319_v59, %v311_v58  ;;  %v155_v58 = vld [vmem:[%s2015_s0 + $0x8] sm:$0xff] }
 0x3d1   :  { %1364 = vmatmul.msk.f32.gmra.mxu0 %vm164_vm0, %v155_v58 }
 0x3d2   :  { %1436 = vtanh.f32 %v321_v60  ;;  %v379_v23 = vrot.slane %v321_v60, 6 }
 0x3d8   :  { %v1437_v61 = vpop.eup %1436 }
 0x3d9   :  { %324 = vrot.lane.b32.xlu0 %v1437_v61, %s1748_s4 }
 0x44b   :  { %v325_v62 = vpop.permute.xlu0 %324 }
 0x44c   :  { %v327_v63 = vmul.f32 %v325_v62, %v305_v55 }
 0x44e   :  { %v329_v0 = vrot.slane %v327_v63, 2  ;;  %v191_v60 = vpop.f32.mrf.mxu0 }
 0x44f   :  { %v1905_v61 = vadd.f32 %v1871_v10, %v191_v60 }
 0x450   :  { %330 = vrot.lane.b32.xlu1 %v329_v0, %s1749_s12 }
 0x4c2   :  { %v331_v1 = vpop.permute.xlu1 %330 }
 0x4c3   :  { %1368 = vmatmul.msk.f32.vlgmr.msra.gmra.mxu3 %vm164_vm0, %v331_v1 }
 0x546   :  { %v351_v2 = vpop.f32.mrf.mxu3 }
 0x547   :  { %v355_v3 = vrot.slane %v351_v2, 4 }
 0x549   :  { %v357_v4 = vadd.f32 %v355_v3, %v1874_v13 }
 0x54b   :  { %1438 = vtanh.f32 %v357_v4  ;;  %v1369_v6 = vmul.f32 -1.442695, %v357_v4 }
 0x54d   :  { %1440 = vpow2.f32 %v1369_v6 }
 0x551   :  { %v1439_v5 = vpop.eup %1438 }
 0x552   :  { %383 = vrot.lane.b32.xlu2 %v1439_v5, %s1748_s4 }
 0x553   :  { %v1441_v7 = vpop.eup %1440 }
 0x554   :  { %v361_v8 = vadd.f32 1.0, %v1441_v7 }
 0x556   :  { %1442 = vrcp.f32 %v361_v8  ;;  %v373_v16 = vand.u32 2147483648, %v361_v8  ;;  %vm367_vm10 = vweird.f32 %v361_v8  ;;  %v371_v17 = vand.u32 2147483647, %v361_v8 }
 0x558   :  { %v374_v19 = vor.u32 1.1754944e-38, %v373_v16  ;;  %vm372_vm12 = vcmp.eq.f32.partialorder %v371_v17, 8.507059e+37 }
 0x55c   :  { %v1443_v9 = vpop.eup %1442 }
 0x55d   :  { %v363_v11 = vmul.f32 %v1443_v9, %v361_v8  ;;  %vm368_vm9 = vweird.f32 %v1443_v9 }
 0x55e   :  { %vm369_vm11 = vmor %vm367_vm10, %vm368_vm9 }
 0x55f   :  { %v364_v12 = vsub.f32 1.0, %v363_v11 }
 0x561   :  { %v365_v14 = vmul.f32 %v1443_v9, %v364_v12 }
 0x563   :  { %v366_v15 = vadd.f32 %v1443_v9, %v365_v14 }
 0x565   :  { %v370_v18 = vsel %vm369_vm11, %v1443_v9, %v366_v15 }
 0x566   :  { %v375_v21 = vsel %vm372_vm12, %v374_v19, %v370_v18 }
 0x567   :  { %v381_v24 = vmul.f32 %v379_v23, %v375_v21 }
 0x5ac   :  { %v384_v20 = vpop.permute.xlu2 %383 }
 0x5ad   :  { %v386_v22 = vmul.f32 %v384_v20, %v375_v21 }
 0x5af   :  { %388 = vrot.lane.b32.xlu0 %v386_v22, %s1749_s12 }
 0x621   :  { %v389_v25 = vpop.permute.xlu0 %388 }
 0x622   :  { %v391_v26 = vadd.f32 %v389_v25, %v381_v24 }
 0x624   :  { %1444 = vtanh.f32 %v391_v26  ;;  %v449_v50 = vrot.slane %v391_v26, 6 }
 0x62a   :  { %v1445_v27 = vpop.eup %1444 }
 0x62b   :  { %394 = vrot.lane.b32.xlu1 %v1445_v27, %s1748_s4 }
 0x69d   :  { %v395_v28 = vpop.permute.xlu1 %394 }
 0x69e   :  { %v397_v29 = vmul.f32 %v395_v28, %v375_v21 }
 0x6a0   :  { %v399_v30 = vrot.slane %v397_v29, 4 }
 0x6a2   :  { %400 = vrot.lane.b32.xlu2 %v399_v30, %s1749_s12 }
 0x6fc   :  { %v401_v31 = vpop.permute.xlu2 %400 }
 0x6fd   :  { %1370 = vmatmul.msk.f32.vlgmr.msrb.gmra.mxu1 %vm164_vm0, %v401_v31 }
 0x77a   :  { %v421_v32 = vpop.f32.mrf.mxu1 }
 0x77b   :  { %v425_v33 = vrot.slane %v421_v32, 2 }
 0x77d   :  { %v427_v34 = vadd.f32 %v425_v33, %v1874_v13 }
 0x77f   :  { %1446 = vtanh.f32 %v427_v34  ;;  %v1371_v36 = vmul.f32 -1.442695, %v427_v34 }
 0x781   :  { %1448 = vpow2.f32 %v1371_v36 }
 0x785   :  { %v1447_v35 = vpop.eup %1446 }
 0x786   :  { %453 = vrot.lane.b32.xlu0 %v1447_v35, %s1748_s4 }
 0x787   :  { %v1449_v37 = vpop.eup %1448 }
 0x788   :  { %v431_v38 = vadd.f32 1.0, %v1449_v37 }
 0x78a   :  { %1450 = vrcp.f32 %v431_v38  ;;  %v443_v44 = vand.u32 2147483648, %v431_v38  ;;  %vm437_vm14 = vweird.f32 %v431_v38  ;;  %v441_v45 = vand.u32 2147483647, %v431_v38 }
 0x78c   :  { %v444_v46 = vor.u32 1.1754944e-38, %v443_v44  ;;  %vm442_vm1 = vcmp.eq.f32.partialorder %v441_v45, 8.507059e+37 }
 0x790   :  { %v1451_v39 = vpop.eup %1450 }
 0x791   :  { %v433_v40 = vmul.f32 %v1451_v39, %v431_v38  ;;  %vm438_vm13 = vweird.f32 %v1451_v39 }
 0x792   :  { %vm439_vm15 = vmor %vm437_vm14, %vm438_vm13 }
 0x793   :  { %v434_v41 = vsub.f32 1.0, %v433_v40 }
 0x795   :  { %v435_v42 = vmul.f32 %v1451_v39, %v434_v41 }
 0x797   :  { %v436_v43 = vadd.f32 %v1451_v39, %v435_v42 }
 0x799   :  { %v440_v13 = vsel %vm439_vm15, %v1451_v39, %v436_v43 }
 0x79a   :  { %v445_v48 = vsel %vm442_vm1, %v444_v46, %v440_v13 }
 0x79b   :  { %v451_v51 = vmul.f32 %v449_v50, %v445_v48 }
 0x7f8   :  { %v454_v47 = vpop.permute.xlu0 %453 }
 0x7f9   :  { %v456_v49 = vmul.f32 %v454_v47, %v445_v48 }
 0x7fb   :  { %458 = vrot.lane.b32.xlu1 %v456_v49, %s1749_s12 }
 0x86d   :  { %v459_v52 = vpop.permute.xlu1 %458 }
 0x86e   :  { %v461_v53 = vadd.f32 %v459_v52, %v451_v51 }
 0x870   :  { %1452 = vtanh.f32 %v461_v53  ;;  %v516_v17 = vrot.slane %v461_v53, 6 }
 0x876   :  { %v1453_v54 = vpop.eup %1452 }
 0x877   :  { %464 = vrot.lane.b32.xlu2 %v1453_v54, %s1748_s4 }
 0x8d1   :  { %v465_v55 = vpop.permute.xlu2 %464 }
 0x8d2   :  { %v467_v56 = vmul.f32 %v465_v55, %v445_v48 }
 0x8d4   :  { %v469_v57 = vrot.slane %v467_v56, 6 }
 0x8d6   :  { %470 = vrot.lane.b32.xlu0 %v469_v57, %s1749_s12 }
 0x948   :  { %v471_v59 = vpop.permute.xlu0 %470 }
 0x949   :  { %1372 = vmatmul.msk.f32.vlgmr.msrb.gmra.mxu2 %vm164_vm0, %v471_v59 }
 0x9cc   :  { %v491_v62 = vpop.f32.mrf.mxu2 }
 0x9cd   :  { %v494_v63 = vadd.f32 %v491_v62, %v1905_v61 }
 0x9cf   :  { %1454 = vtanh.f32 %v494_v63  ;;  %v1373_v1 = vmul.f32 -1.442695, %v494_v63 }
 0x9d1   :  { %1456 = vpow2.f32 %v1373_v1 }
 0x9d5   :  { %v1455_v0 = vpop.eup %1454 }
 0x9d6   :  { %520 = vrot.lane.b32.xlu1 %v1455_v0, %s1748_s4 }
 0x9d7   :  { %v1457_v2 = vpop.eup %1456 }
 0x9d8   :  { %v498_v3 = vadd.f32 1.0, %v1457_v2 }
 0x9da   :  { %1458 = vrcp.f32 %v498_v3  ;;  %v510_v10 = vand.u32 2147483648, %v498_v3  ;;  %vm504_vm3 = vweird.f32 %v498_v3  ;;  %v508_v9 = vand.u32 2147483647, %v498_v3 }
 0x9dc   :  { %v511_v12 = vor.u32 1.1754944e-38, %v510_v10  ;;  %vm509_vm5 = vcmp.eq.f32.partialorder %v508_v9, 8.507059e+37 }
 0x9e0   :  { %v1459_v4 = vpop.eup %1458 }
 0x9e1   :  { %v500_v5 = vmul.f32 %v1459_v4, %v498_v3  ;;  %vm505_vm2 = vweird.f32 %v1459_v4 }
 0x9e2   :  { %vm506_vm4 = vmor %vm504_vm3, %vm505_vm2  ;;  %vm819_vm3 = vcmask 1043456  }
 0x9e3   :  { %v501_v6 = vsub.f32 1.0, %v500_v5 }
 0x9e5   :  { %v502_v7 = vmul.f32 %v1459_v4, %v501_v6 }
 0x9e7   :  { %v503_v8 = vadd.f32 %v1459_v4, %v502_v7 }
 0x9e9   :  { %v507_v11 = vsel %vm506_vm4, %v1459_v4, %v503_v8  ;;  %vm815_vm4 = vcmask 31744  }
 0x9ea   :  { %v512_v15 = vsel %vm509_vm5, %v511_v12, %v507_v11  ;;  %vm866_vm5 = vcmask 130048  }
 0x9eb   :  { %v518_v18 = vmul.f32 %v516_v17, %v512_v15 }
 0xa48   :  { %v521_v14 = vpop.permute.xlu1 %520 }
 0xa49   :  { %v523_v16 = vmul.f32 %v521_v14, %v512_v15 }
 0xa4b   :  { %525 = vrot.lane.b32.xlu2 %v523_v16, %s1749_s12 }
 0xaa5   :  { %v526_v19 = vpop.permute.xlu2 %525 }
 0xaa6   :  { %v528_v20 = vadd.f32 %v526_v19, %v518_v18 }
 0xaa8   :  { %1460 = vtanh.f32 %v528_v20  ;;  %v585_v44 = vrot.slane %v528_v20, 6 }
 0xaae   :  { %v1461_v21 = vpop.eup %1460 }
 0xaaf   :  { %531 = vrot.lane.b32.xlu0 %v1461_v21, %s1748_s4 }
 0xb21   :  { %v532_v22 = vpop.permute.xlu0 %531 }
 0xb22   :  { %v534_v23 = vmul.f32 %v532_v22, %v512_v15 }
 0xb24   :  { %536 = vrot.lane.b32.xlu1 %v534_v23, %s1749_s12 }
 0xb96   :  { %v537_v24 = vpop.permute.xlu1 %536 }
 0xb97   :  { %1374 = vmatmul.msk.f32.vlgmr.msrb.gmra.mxu3 %vm164_vm0, %v537_v24 }
 0xc1a   :  { %v557_v25 = vpop.f32.mrf.mxu3 }
 0xc1b   :  { %v561_v26 = vrot.slane %v557_v25, 6 }
 0xc1d   :  { %v563_v27 = vadd.f32 %v561_v26, %v1905_v61 }
 0xc1f   :  { %1462 = vtanh.f32 %v563_v27  ;;  %v1375_v29 = vmul.f32 -1.442695, %v563_v27 }
 0xc21   :  { %1464 = vpow2.f32 %v1375_v29 }
 0xc25   :  { %v1463_v28 = vpop.eup %1462 }
 0xc26   :  { %589 = vrot.lane.b32.xlu2 %v1463_v28, %s1748_s4 }
 0xc27   :  { %v1465_v30 = vpop.eup %1464 }
 0xc28   :  { %v567_v31 = vadd.f32 1.0, %v1465_v30 }
 0xc2a   :  { %1466 = vrcp.f32 %v567_v31  ;;  %v579_v37 = vand.u32 2147483648, %v567_v31  ;;  %vm573_vm7 = vweird.f32 %v567_v31  ;;  %v577_v38 = vand.u32 2147483647, %v567_v31 }
 0xc2c   :  { %v580_v40 = vor.u32 1.1754944e-38, %v579_v37  ;;  %vm578_vm9 = vcmp.eq.f32.partialorder %v577_v38, 8.507059e+37 }
 0xc30   :  { %v1467_v32 = vpop.eup %1466 }
 0xc31   :  { %v569_v33 = vmul.f32 %v1467_v32, %v567_v31  ;;  %vm574_vm6 = vweird.f32 %v1467_v32 }
 0xc32   :  { %vm575_vm8 = vmor %vm573_vm7, %vm574_vm6  ;;  %vm808_vm6 = vcmask 123904   ;;  %vm897_vm7 = vcmask 24576  }
 0xc33   :  { %v570_v34 = vsub.f32 1.0, %v569_v33 }
 0xc35   :  { %v571_v35 = vmul.f32 %v1467_v32, %v570_v34 }
 0xc37   :  { %v572_v36 = vadd.f32 %v1467_v32, %v571_v35 }
 0xc39   :  { %v576_v39 = vsel %vm575_vm8, %v1467_v32, %v572_v36 }
 0xc3a   :  { %v581_v42 = vsel %vm578_vm9, %v580_v40, %v576_v39  ;;  %vm1070_vm9 = vcmask 25601  }
 0xc3b   :  { %v587_v45 = vmul.f32 %v585_v44, %v581_v42  ;;  %v813_v44 = vld [vmem:[%s2018_s3] sm:$0xff] }
 0xc80   :  { %v590_v41 = vpop.permute.xlu2 %589 }
 0xc81   :  { %v592_v43 = vmul.f32 %v590_v41, %v581_v42  ;;  %v777_v41 = vld [vmem:[%s2023_s8 + $0x18] sm:$0xff] }
 0xc82   :  { %858 = vmatpush.msrb.mxu1 %v777_v41  ;;  %796 = vmatpush.msra.mxu3 %v777_v41 }
 0xc83   :  { %594 = vrot.lane.b32.xlu0 %v592_v43, %s1749_s12  ;;  %v814_v43 = vld [vmem:[%s2024_s9] sm:$0xf] }
 0xc84   :  { %1382 = vmatpush.msk.msra.mxu0 %vm819_vm3, %v814_v43 }
 0xcf5   :  { %v595_v13 = vpop.permute.xlu0 %594 }
 0xcf6   :  { %v597_v46 = vadd.f32 %v595_v13, %v587_v45  ;;  %v775_v45 = vld [vmem:[%s2023_s8 + $0x8] sm:$0xff] }
 0xcf7   :  { %v747_v13 = vld [vmem:[#allocation10 + $0x18] sm:$0xff] }
 0xcf8   :  { %1468 = vtanh.f32 %v597_v46  ;;  %v655_v8 = vrot.slane %v597_v46, 6  ;;  %v746_v46 = vld [vmem:[#allocation10 + $0x10] sm:$0xff]  ;;  %766 = vmatpush.msra.mxu2 %v747_v13 }
 0xcfa   :  { %767 = vmatpush.msra.mxu2 %v746_v46 }
 0xcfe   :  { %v1469_v47 = vpop.eup %1468 }
 0xcff   :  { %600 = vrot.lane.b32.xlu1 %v1469_v47, %s1748_s4  ;;  %v774_v47 = vld [vmem:[%s2023_s8] sm:$0xff] }
 0xd71   :  { %v601_v48 = vpop.permute.xlu1 %600 }
 0xd72   :  { %v603_v49 = vmul.f32 %v601_v48, %v581_v42  ;;  %v776_v42 = vld [vmem:[%s2023_s8 + $0x10] sm:$0xff]  ;;  %v812_v48 = vld [vmem:[#allocation5] sm:$0xff] }
 0xd73   :  { %859 = vmatpush.msrb.mxu1 %v776_v42  ;;  %797 = vmatpush.msra.mxu3 %v776_v42 }
 0xd74   :  { %v605_v50 = vrot.slane %v603_v49, 2  ;;  %v780_v49 = vld [vmem:[#allocation2] sm:$0x3] }
 0xd75   :  { %860 = vmatpush.msrb.mxu1 %v775_v45  ;;  %798 = vmatpush.msra.mxu3 %v775_v45 }
 0xd76   :  { %606 = vrot.lane.b32.xlu2 %v605_v50, %s1749_s12  ;;  %v745_v50 = vld [vmem:[#allocation10 + $0x8] sm:$0xff] }
 0xd77   :  { %861 = vmatpush.msrb.mxu1 %v774_v47  ;;  %799 = vmatpush.msra.mxu3 %v774_v47 }
 0xd78   :  { %1381 = vmatmul.msk.f32.vlgmr.msra.gmra.mxu3 %vm164_vm0, %v780_v49  ;;  %768 = vmatpush.msra.mxu2 %v745_v50 }
 0xdd0   :  { %v607_v51 = vpop.permute.xlu2 %606 }
 0xdd1   :  { %1376 = vmatmul.msk.f32.vlgmr.msrb.gmra.mxu0 %vm164_vm0, %v607_v51  ;;  %v744_v51 = vld [vmem:[#allocation10] sm:$0xff] }
 0xdd2   :  { %769 = vmatpush.msra.mxu2 %v744_v51 }
 0xdd9   :  { %1383 = vmatmul.msk.f32.vlgmr.msra.gmra.mxu0 %vm815_vm4, %v813_v44 }
 0xe4e   :  { %v627_v52 = vpop.f32.mrf.mxu0 }
 0xe4f   :  { %v631_v53 = vrot.slane %v627_v52, 4 }
 0xe51   :  { %v633_v54 = vadd.f32 %v631_v53, %v1905_v61 }
 0xe53   :  { %1470 = vtanh.f32 %v633_v54  ;;  %v1377_v56 = vmul.f32 -1.442695, %v633_v54 }
 0xe55   :  { %1472 = vpow2.f32 %v1377_v56 }
 0xe59   :  { %v1471_v55 = vpop.eup %1470 }
 0xe5a   :  { %659 = vrot.lane.b32.xlu0 %v1471_v55, %s1748_s4  ;;  %v840_v55 = vpop.f32.mrf.mxu0 }
 0xe5b   :  { %v1473_v57 = vpop.eup %1472 }
 0xe5c   :  { %v637_v58 = vadd.f32 1.0, %v1473_v57 }
 0xe5e   :  { %1474 = vrcp.f32 %v637_v58  ;;  %v649_v1 = vand.u32 2147483648, %v637_v58  ;;  %vm643_vm11 = vweird.f32 %v637_v58  ;;  %v647_v2 = vand.u32 2147483647, %v637_v58 }
 0xe60   :  { %v650_v4 = vor.u32 1.1754944e-38, %v649_v1  ;;  %vm648_vm13 = vcmp.eq.f32.partialorder %v647_v2, 8.507059e+37  ;;  %v778_v1 = vld [vmem:[%s2025_s10] sm:$0x1]  ;;  %v1231_v2 = vld [vmem:[#allocation11 + $0x8] sm:$0xff]  ;;  %s1751_s10 = smov 4  }
 0xe64   :  { %v1475_v59 = vpop.eup %1474 }
 0xe65   :  { %v639_v60 = vmul.f32 %v1475_v59, %v637_v58  ;;  %vm644_vm10 = vweird.f32 %v1475_v59 }
 0xe66   :  { %vm645_vm12 = vmor %vm643_vm11, %vm644_vm10 }
 0xe67   :  { %v640_v62 = vsub.f32 1.0, %v639_v60  ;;  %v801_v60 = vpop.f32.mrf.mxu3 }
 0xe69   :  { %v641_v63 = vmul.f32 %v1475_v59, %v640_v62 }
 0xe6b   :  { %v642_v0 = vadd.f32 %v1475_v59, %v641_v63 }
 0xe6d   :  { %v646_v3 = vsel %vm645_vm12, %v1475_v59, %v642_v0  ;;  %v1421_v59 = vld [vmem:[%s2026_s11] ss:$0 sm:$0xff] }
 0xe6e   :  { %v651_v6 = vsel %vm648_vm13, %v650_v4, %v646_v3  ;;  %v807_v62 = vmul.f32 %v1421_v59, %v801_v60  ;;  %v1230_v3 = vld [vmem:[#allocation11] sm:$0xff] }
 0xe6f   :  { %v657_v10 = vmul.f32 %v655_v8, %v651_v6 }
 0xe70   :  { %v809_v63 = vsel %vm808_vm6, %v807_v62, 0.0 }
 0xecc   :  { %v660_v5 = vpop.permute.xlu0 %659 }
 0xecd   :  { %v662_v7 = vmul.f32 %v660_v5, %v651_v6 }
 0xecf   :  { %664 = vrot.lane.b32.xlu1 %v662_v7, %s1749_s12 }
 0xf41   :  { %v665_v9 = vpop.permute.xlu1 %664 }
 0xf42   :  { %v667_v11 = vadd.f32 %v665_v9, %v657_v10 }
 0xf44   :  { %1476 = vtanh.f32 %v667_v11  ;;  %v725_v36 = vrot.slane %v667_v11, 6 }
 0xf4a   :  { %v1477_v12 = vpop.eup %1476 }
 0xf4b   :  { %670 = vrot.lane.b32.xlu2 %v1477_v12, %s1748_s4 }
 0xfa5   :  { %v671_v14 = vpop.permute.xlu2 %670 }
 0xfa6   :  { %v673_v15 = vmul.f32 %v671_v14, %v651_v6 }
 0xfa8   :  { %v675_v16 = vrot.slane %v673_v15, 4 }
 0xfaa   :  { %676 = vrot.lane.b32.xlu0 %v675_v16, %s1749_s12 }
0x101c   :  { %v677_v17 = vpop.permute.xlu0 %676 }
0x101d   :  { %1378 = vmatmul.msk.f32.vlgmr.msra.gmra.mxu1 %vm164_vm0, %v677_v17 }
0x1025   :  { %1384 = vmatmul.msk.f32.vlgmr.msrb.gmra.mxu1 %vm164_vm0, %v812_v48 }
0x109a   :  { %v697_v18 = vpop.f32.mrf.mxu1 }
0x109b   :  { %v701_v19 = vrot.slane %v697_v18, 2 }
0x109d   :  { %v703_v20 = vadd.f32 %v701_v19, %v1905_v61 }
0x109f   :  { %1478 = vtanh.f32 %v703_v20  ;;  %v1379_v22 = vmul.f32 -1.442695, %v703_v20 }
0x10a1   :  { %1480 = vpow2.f32 %v1379_v22 }
0x10a2   :  { %v863_v56 = vpop.f32.mrf.mxu1 }
0x10a3   :  { %v864_v57 = vadd.f32 %v863_v56, %v840_v55 }
0x10a5   :  { %v1479_v21 = vpop.eup %1478  ;;  %1385 = vmatpush.xpose.msk.msrb.mxu2 %vm866_vm5, %v864_v57  ;;  %v1040_v58 = vrot.slane %v864_v57, 4  ;;  %1387 = vmatpush.xpose.msk.msrb.mxu3 %vm866_vm5, %v864_v57 }
0x10a6   :  { %729 = vrot.lane.b32.xlu1 %v1479_v21, %s1748_s4  ;;  %1389 = vmatpush.msk.msrb.mxu0 %vm819_vm3, %v864_v57 }
0x10a7   :  { %v1481_v23 = vpop.eup %1480  ;;  %1391 = vmatpush.msk.msra.mxu1 %vm819_vm3, %v864_v57 }
0x10a8   :  { %v707_v24 = vadd.f32 1.0, %v1481_v23  ;;  %1397 = vmatpush.msk.msra.mxu0 %vm819_vm3, %v1040_v58 }
0x10a9   :  { %1395 = vmatpush.xpose.msk.msra.mxu3 %vm866_vm5, %v1040_v58  ;;  %1399 = vmatpush.msk.msrb.mxu1 %vm819_vm3, %v1040_v58 }
0x10aa   :  { %1482 = vrcp.f32 %v707_v24  ;;  %v719_v30 = vand.u32 2147483648, %v707_v24  ;;  %vm713_vm15 = vweird.f32 %v707_v24  ;;  %v717_v31 = vand.u32 2147483647, %v707_v24 }
0x10ac   :  { %v720_v32 = vor.u32 1.1754944e-38, %v719_v30  ;;  %vm718_vm2 = vcmp.eq.f32.partialorder %v717_v31, 8.507059e+37 }
0x10b0   :  { %v1483_v25 = vpop.eup %1482 }
0x10b1   :  { %v709_v26 = vmul.f32 %v1483_v25, %v707_v24  ;;  %vm714_vm14 = vweird.f32 %v1483_v25 }
0x10b2   :  { %vm715_vm1 = vmor %vm713_vm15, %vm714_vm14 }
0x10b3   :  { %v710_v27 = vsub.f32 1.0, %v709_v26 }
0x10b5   :  { %v711_v28 = vmul.f32 %v1483_v25, %v710_v27 }
0x10b7   :  { %v712_v29 = vadd.f32 %v1483_v25, %v711_v28 }
0x10b9   :  { %v716_v61 = vsel %vm715_vm1, %v1483_v25, %v712_v29 }
0x10ba   :  { %v721_v34 = vsel %vm718_vm2, %v720_v32, %v716_v61 }
0x10bb   :  { %v727_v37 = vmul.f32 %v725_v36, %v721_v34 }
0x1118   :  { %v730_v33 = vpop.permute.xlu1 %729 }
0x1119   :  { %v732_v35 = vmul.f32 %v730_v33, %v721_v34 }
0x111b   :  { %734 = vrot.lane.b32.xlu2 %v732_v35, %s1749_s12 }
0x1175   :  { %v735_v38 = vpop.permute.xlu2 %734 }
0x1176   :  { %v737_v39 = vadd.f32 %v735_v38, %v727_v37 }
0x1178   :  { %1484 = vtanh.f32 %v737_v39 }
0x117e   :  { %v1485_v40 = vpop.eup %1484 }
0x117f   :  { %740 = vrot.lane.b32.xlu0 %v1485_v40, %s1748_s4 }
0x11f1   :  { %v741_v52 = vpop.permute.xlu0 %740 }
0x11f2   :  { %v743_v53 = vmul.f32 %v741_v52, %v721_v34 }
0x11f4   :  { %v749_v54 = vrot.slane %v743_v53, 6 }
0x11f6   :  { %750 = vrot.lane.b32.xlu1 %v749_v54, %s1749_s12  ;;  %s1334_s12 = sshll.u32 %s2029_s14, 4  ;;  %s1335_s12 = int_to_ptr.hbm [resolvable:$true] %s1334_s12 }
0x1220   :  { %810 = vadd.xlane.f32.xlu1 %v809_v63 }
0x1268   :  { %v751_v0 = vpop.permute.xlu1 %750 }
0x1269   :  { %1380 = vmatmul.msk.f32.vlgmr.msra.gmra.mxu2 %vm164_vm0, %v751_v0 }
0x126a   :  { %1393 = vmatpush.xpose.msk.msra.mxu2 %vm866_vm5, %v1040_v58 }
0x1271   :  { %1386 = vmatmul.msk.f32.vlgmr.msrb.gmra.mxu2 %vm866_vm5, %v778_v1 }
0x1272   :  { %1248 = vmatpush.msrb.mxu2 %v1231_v2 }
0x1274   :  { %1249 = vmatpush.msrb.mxu2 %v1230_v3 }
0x1279   :  { %1394 = vmatmul.msk.f32.vlgmr.msra.gmra.mxu2 %vm866_vm5, %v778_v1 }
0x1293   :  { %v811_v8 = vpop.xlane.xlu1 %810 }
0x12ec   :  { %v1969_v4 = vpop.f32.mrf.mxu2 }
0x12ed   :  { %944 = vrot.lane.b32.xlu2 %v1969_v4, %s1750_s13  ;;  %1401 = vmatmul.msk.f32.vlgmr.msrb.gmra.mxu2 %vm866_vm5, %v1969_v4  ;;  %v1116_v5 = vrot.slane %v1969_v4, 1 }
0x12ef   :  { %1117 = vrot.lane.b32.xlu0 %v1116_v5, %s1750_s13 }
0x12f4   :  { %v890_v6 = vpop.f32.mrf.mxu2 }
0x12f5   :  { %v893_v9 = vadd.f32 %v890_v6, %v811_v8 }
0x12f7   :  { %v895_v12 = vmul.f32 0.2, %v893_v9  ;;  %vm894_vm0 = vcmp.gt.f32.partialorder %v893_v9, 0.0 }
0x12f9   :  { %v896_v15 = vsel %vm894_vm0, %v893_v9, %v895_v12 }
0x12fa   :  { %v898_v16 = vsel %vm897_vm7, %v896_v15, -inf }
0x12fc   :  { %v1060_v7 = vpop.f32.mrf.mxu2 }
0x12fd   :  { %v1064_v10 = vrot.slane %v1060_v7, 7 }
0x12ff   :  { %v1066_v11 = vadd.f32 %v1064_v10, %v811_v8 }
0x1301   :  { %v1068_v14 = vmul.f32 0.2, %v1066_v11  ;;  %vm1067_vm8 = vcmp.gt.f32.partialorder %v1066_v11, 0.0 }
0x1303   :  { %v1069_v17 = vsel %vm1067_vm8, %v1066_v11, %v1068_v14 }
0x1304   :  { %v1071_v18 = vsel %vm1070_vm9, %v1069_v17, -inf }
0x1316   :  { %899 = vmax.xlane.f32.xlu2 %v898_v16 }
0x1319   :  { %1072 = vmax.xlane.f32.xlu0 %v1071_v18 }
0x1347   :  { %v945_v19 = vpop.permute.xlu2 %944 }
0x1348   :  { %1388 = vmatmul.msk.f32.vlgmr.msrb.gmra.mxu3 %vm866_vm5, %v945_v19 }
0x1361   :  { %v1118_v20 = vpop.permute.xlu0 %1117 }
0x1362   :  { %1396 = vmatmul.msk.f32.vlgmr.msra.gmra.mxu3 %vm866_vm5, %v1118_v20 }
0x1389   :  { %v900_v21 = vpop.xlane.xlu2 %899 }
0x138a   :  { %v901_v22 = vsub.f32 %v896_v15, %v900_v21 }
0x138c   :  { %v902_v23 = vmul.f32 1.442695, %v901_v22  ;;  %v1073_v24 = vpop.xlane.xlu0 %1072 }
0x138d   :  { %v1074_v25 = vsub.f32 %v1069_v17, %v1073_v24 }
0x138e   :  { %1486 = vpow2.f32 %v902_v23 }
0x138f   :  { %v1075_v26 = vmul.f32 1.442695, %v1074_v25 }
0x1391   :  { %1488 = vpow2.f32 %v1075_v26 }
0x1394   :  { %v1487_v27 = vpop.eup %1486 }
0x1395   :  { %v904_v28 = vsel %vm897_vm7, %v1487_v27, 0.0 }
0x1396   :  { %905 = vadd.xlane.f32.xlu2 %v904_v28 }
0x1397   :  { %v1489_v29 = vpop.eup %1488 }
0x1398   :  { %v1077_v30 = vsel %vm1070_vm9, %v1489_v29, 0.0 }
0x1399   :  { %1078 = vadd.xlane.f32.xlu1 %v1077_v30 }
0x13cb   :  { %v965_v31 = vpop.f32.mrf.mxu3 }
0x13cc   :  { %v968_v61 = vsel %vm897_vm7, %v965_v31, -inf }
0x13cd   :  { %969 = vmax.xlane.f32.xlu2 %v968_v61 }
0x13e5   :  { %v1138_v32 = vpop.f32.mrf.mxu3 }
0x13e6   :  { %v1141_v33 = vsel %vm897_vm7, %v1138_v32, -inf }
0x13e7   :  { %1142 = vmax.xlane.f32.xlu0 %v1141_v33 }
0x1409   :  { %v906_v34 = vpop.xlane.xlu2 %905 }
0x140a   :  { %1490 = vrcp.f32 %v906_v34  ;;  %v918_v40 = vand.u32 2147483648, %v906_v34  ;;  %v916_v43 = vand.u32 2147483647, %v906_v34  ;;  %vm912_vm11 = vweird.f32 %v906_v34 }
0x140c   :  { %v1079_v35 = vpop.xlane.xlu1 %1078  ;;  %v919_v47 = vor.u32 1.1754944e-38, %v918_v40  ;;  %vm917_vm14 = vcmp.eq.f32.partialorder %v916_v43, 8.507059e+37 }
0x140d   :  { %1492 = vrcp.f32 %v1079_v35  ;;  %v1091_v45 = vand.u32 2147483648, %v1079_v35  ;;  %v1089_v48 = vand.u32 2147483647, %v1079_v35  ;;  %vm1085_vm15 = vweird.f32 %v1079_v35 }
0x140f   :  { %v1092_v53 = vor.u32 1.1754944e-38, %v1091_v45  ;;  %vm1090_vm2 = vcmp.eq.f32.partialorder %v1089_v48, 8.507059e+37 }
0x1410   :  { %v1491_v36 = vpop.eup %1490 }
0x1411   :  { %v908_v37 = vmul.f32 %v1491_v36, %v906_v34  ;;  %vm913_vm10 = vweird.f32 %v1491_v36 }
0x1412   :  { %vm914_vm12 = vmor %vm912_vm11, %vm913_vm10 }
0x1413   :  { %v1493_v38 = vpop.eup %1492  ;;  %v909_v39 = vsub.f32 1.0, %v908_v37 }
0x1414   :  { %v1081_v41 = vmul.f32 %v1493_v38, %v1079_v35  ;;  %vm1086_vm13 = vweird.f32 %v1493_v38 }
0x1415   :  { %v910_v42 = vmul.f32 %v1491_v36, %v909_v39  ;;  %vm1087_vm1 = vmor %vm1085_vm15, %vm1086_vm13  ;;  %vm1217_vm15 = vcmask 1040384  }
0x1416   :  { %v1082_v44 = vsub.f32 1.0, %v1081_v41 }
0x1417   :  { %v911_v13 = vadd.f32 %v1491_v36, %v910_v42 }
0x1418   :  { %v1083_v46 = vmul.f32 %v1493_v38, %v1082_v44 }
0x1419   :  { %v915_v49 = vsel %vm914_vm12, %v1491_v36, %v911_v13 }
0x141a   :  { %v920_v50 = vsel %vm917_vm14, %v919_v47, %v915_v49  ;;  %v1084_v51 = vadd.f32 %v1493_v38, %v1083_v46 }
0x141b   :  { %v921_v52 = vmul.f32 %v1487_v27, %v920_v50 }
0x141c   :  { %v1088_v54 = vsel %vm1087_vm1, %v1493_v38, %v1084_v51 }
0x141d   :  { %vm922_vm6 = vcmp.ge.f32.partialorder %v921_v52, 0.05  ;;  %v1093_v55 = vsel %vm1090_vm2, %v1092_v53, %v1088_v54 }
0x141e   :  { %v923_v56 = vsel %vm922_vm6, %v921_v52, 0.0  ;;  %v1094_v57 = vmul.f32 %v1489_v29, %v1093_v55 }
0x141f   :  { %v924_v58 = vsel %vm897_vm7, %v923_v56, 0.0 }
0x1420   :  { %925 = vadd.xlane.f32.xlu1 %v924_v58  ;;  %vm1095_vm0 = vcmp.ge.f32.partialorder %v1094_v57, 0.05 }
0x1421   :  { %v1096_v59 = vsel %vm1095_vm0, %v1094_v57, 0.0 }
0x1422   :  { %v1097_v60 = vsel %vm1070_vm9, %v1096_v59, 0.0 }
0x1423   :  { %1098 = vadd.xlane.f32.xlu0 %v1097_v60 }
0x1440   :  { %v970_v62 = vpop.xlane.xlu2 %969 }
0x1441   :  { %v971_v63 = vsub.f32 %v965_v31, %v970_v62 }
0x1443   :  { %v972_v0 = vmul.f32 1.442695, %v971_v63 }
0x1445   :  { %1494 = vpow2.f32 %v972_v0 }
0x144b   :  { %v1985_v1 = vpop.eup %1494 }
0x144c   :  { %v974_v2 = vsel %vm897_vm7, %v1985_v1, 0.0 }
0x144d   :  { %975 = vadd.xlane.f32.xlu2 %v974_v2  ;;  %v1263_v2 = vld [vmem:[#allocation13] sm:$0xff] }
0x145a   :  { %v1143_v3 = vpop.xlane.xlu0 %1142 }
0x145b   :  { %v1144_v5 = vsub.f32 %v1138_v32, %v1143_v3 }
0x145d   :  { %v1145_v6 = vmul.f32 1.442695, %v1144_v5 }
0x145f   :  { %1496 = vpow2.f32 %v1145_v6 }
0x1465   :  { %v1989_v7 = vpop.eup %1496 }
0x1466   :  { %v1147_v8 = vsel %vm897_vm7, %v1989_v7, 0.0 }
0x1467   :  { %1148 = vadd.xlane.f32.xlu1 %v1147_v8 }
0x1493   :  { %v926_v10 = vpop.xlane.xlu1 %925 }
0x1494   :  { %v927_v9 = vadd.f32 1e-09, %v926_v10 }
0x1496   :  { %1498 = vrcp.f32 %v927_v9  ;;  %v1099_v11 = vpop.xlane.xlu0 %1098  ;;  %v939_v18 = vand.u32 2147483648, %v927_v9  ;;  %v937_v21 = vand.u32 2147483647, %v927_v9  ;;  %vm933_vm9 = vweird.f32 %v927_v9 }
0x1497   :  { %v1100_v12 = vadd.f32 1e-09, %v1099_v11 }
0x1498   :  { %v940_v25 = vor.u32 1.1754944e-38, %v939_v18  ;;  %vm938_vm11 = vcmp.eq.f32.partialorder %v937_v21, 8.507059e+37 }
0x1499   :  { %1500 = vrcp.f32 %v1100_v12  ;;  %v1112_v24 = vand.u32 2147483648, %v1100_v12  ;;  %v1110_v27 = vand.u32 2147483647, %v1100_v12  ;;  %vm1106_vm12 = vweird.f32 %v1100_v12 }
0x149b   :  { %v1113_v31 = vor.u32 1.1754944e-38, %v1112_v24  ;;  %vm1111_vm14 = vcmp.eq.f32.partialorder %v1110_v27, 8.507059e+37 }
0x149c   :  { %v1499_v14 = vpop.eup %1498 }
0x149d   :  { %v929_v15 = vmul.f32 %v1499_v14, %v927_v9  ;;  %vm934_vm8 = vweird.f32 %v1499_v14 }
0x149e   :  { %vm935_vm7 = vmor %vm933_vm9, %vm934_vm8 }
0x149f   :  { %v1501_v16 = vpop.eup %1500  ;;  %v930_v17 = vsub.f32 1.0, %v929_v15 }
0x14a0   :  { %v1102_v19 = vmul.f32 %v1501_v16, %v1100_v12  ;;  %vm1107_vm10 = vweird.f32 %v1501_v16 }
0x14a1   :  { %v931_v20 = vmul.f32 %v1499_v14, %v930_v17  ;;  %vm1108_vm13 = vmor %vm1106_vm12, %vm1107_vm10 }
0x14a2   :  { %v1103_v22 = vsub.f32 1.0, %v1102_v19 }
0x14a3   :  { %v932_v23 = vadd.f32 %v1499_v14, %v931_v20  ;;  %v1251_v20 = vpop.f32.mrf.mxu2 }
0x14a4   :  { %v1104_v26 = vmul.f32 %v1501_v16, %v1103_v22  ;;  %v1289_v21 = vrot.slane %v1251_v20, 6  ;;  %v1291_v22 = vrot.slane %v1251_v20, 4 }
0x14a5   :  { %v936_v28 = vsel %vm935_vm7, %v1499_v14, %v932_v23 }
0x14a6   :  { %v1105_v29 = vadd.f32 %v1501_v16, %v1104_v26  ;;  %v941_v30 = vsel %vm938_vm11, %v940_v25, %v936_v28  ;;  %vm1325_vm11 = vcmask 58368  }
0x14a7   :  { %v942_v61 = vmul.f32 %v941_v30, %v923_v56 }
0x14a8   :  { %v1109_v32 = vsel %vm1108_vm13, %v1501_v16, %v1105_v29 }
0x14a9   :  { %1390 = vmatmul.msk.f32.vlgmr.msrb.gmra.mxu0 %vm815_vm4, %v942_v61  ;;  %v1114_v33 = vsel %vm1111_vm14, %v1113_v31, %v1109_v32  ;;  %vm1317_vm14 = vcmask 1045504  }
0x14aa   :  { %v1115_v34 = vmul.f32 %v1114_v33, %v1096_v59 }
0x14ac   :  { %v1223_v35 = vsel %vm1217_vm15, %v942_v61, %v1115_v34  ;;  %v1166_v36 = vrot.slane %v1115_v34, 1 }
0x14b1   :  { %1398 = vmatmul.msk.f32.vlgmr.msra.gmra.mxu0 %vm815_vm4, %v1166_v36 }
0x14c0   :  { %v976_v37 = vpop.xlane.xlu2 %975 }
0x14c1   :  { %1502 = vrcp.f32 %v976_v37  ;;  %v988_v41 = vand.u32 2147483648, %v976_v37  ;;  %v986_v43 = vand.u32 2147483647, %v976_v37  ;;  %vm982_vm2 = vweird.f32 %v976_v37 }
0x14c3   :  { %v989_v45 = vor.u32 1.1754944e-38, %v988_v41  ;;  %vm987_vm0 = vcmp.eq.f32.partialorder %v986_v43, 8.507059e+37 }
0x14c7   :  { %v1503_v38 = vpop.eup %1502 }
0x14c8   :  { %v978_v39 = vmul.f32 %v1503_v38, %v976_v37  ;;  %vm983_vm1 = vweird.f32 %v1503_v38  ;;  %v1315_v37 = vrot.slane %v1969_v4, 2 }
0x14c9   :  { %vm984_vm6 = vmor %vm982_vm2, %vm983_vm1 }
0x14ca   :  { %v979_v40 = vsub.f32 1.0, %v978_v39 }
0x14cc   :  { %v980_v42 = vmul.f32 %v1503_v38, %v979_v40 }
0x14ce   :  { %v981_v44 = vadd.f32 %v1503_v38, %v980_v42 }
0x14d0   :  { %v985_v13 = vsel %vm984_vm6, %v1503_v38, %v981_v44 }
0x14d1   :  { %v990_v46 = vsel %vm987_vm0, %v989_v45, %v985_v13 }
0x14d2   :  { %v991_v47 = vmul.f32 %v1985_v1, %v990_v46  ;;  %v1264_v1 = vld [vmem:[#allocation13 + $0x8] sm:$0xff] }
0x14d3   :  { %1282 = vmatpush.msrb.mxu3 %v1264_v1 }
0x14d4   :  { %1392 = vmatmul.msk.f32.vlgmr.msra.gmra.mxu1 %vm815_vm4, %v991_v47 }
0x14d5   :  { %1283 = vmatpush.msrb.mxu3 %v1263_v2 }
0x14da   :  { %v1149_v48 = vpop.xlane.xlu1 %1148 }
0x14db   :  { %1504 = vrcp.f32 %v1149_v48  ;;  %v1161_v52 = vand.u32 2147483648, %v1149_v48  ;;  %v1159_v54 = vand.u32 2147483647, %v1149_v48  ;;  %vm1155_vm9 = vweird.f32 %v1149_v48 }
0x14dd   :  { %v1162_v56 = vor.u32 1.1754944e-38, %v1161_v52  ;;  %vm1160_vm10 = vcmp.eq.f32.partialorder %v1159_v54, 8.507059e+37 }
0x14e1   :  { %v1505_v49 = vpop.eup %1504 }
0x14e2   :  { %v1151_v50 = vmul.f32 %v1505_v49, %v1149_v48  ;;  %vm1156_vm8 = vweird.f32 %v1505_v49 }
0x14e3   :  { %vm1157_vm7 = vmor %vm1155_vm9, %vm1156_vm8 }
0x14e4   :  { %v1152_v51 = vsub.f32 1.0, %v1151_v50 }
0x14e6   :  { %v1153_v53 = vmul.f32 %v1505_v49, %v1152_v51 }
0x14e8   :  { %v1154_v55 = vadd.f32 %v1505_v49, %v1153_v53 }
0x14ea   :  { %v1158_v57 = vsel %vm1157_vm7, %v1505_v49, %v1154_v55 }
0x14eb   :  { %v1163_v58 = vsel %vm1160_vm10, %v1162_v56, %v1158_v57 }
0x14ec   :  { %v1164_v59 = vmul.f32 %v1989_v7, %v1163_v58 }
0x14ee   :  { %1400 = vmatmul.msk.f32.vlgmr.msrb.gmra.mxu1 %vm815_vm4, %v1164_v59  ;;  %v1224_v60 = vrot.slane %v1164_v59, 7 }
0x14f0   :  { %v1226_v62 = vsel %vm1217_vm15, %v991_v47, %v1224_v60 }
0x14f1   :  { %1321 = vrot.lane.b32.xlu2 %v1226_v62, %s1751_s10 }
0x1526   :  { %v1014_v3 = vpop.f32.mrf.mxu0 }
0x152e   :  { %v1188_v6 = vpop.f32.mrf.mxu0 }
0x152f   :  { %v1215_v7 = vrot.slane %v1188_v6, 7 }
0x1531   :  { %v1218_v10 = vsel %vm1217_vm15, %v1014_v3, %v1215_v7 }
0x1532   :  { %v1227_v12 = vmul.f32 0.5, %v1218_v10 }
0x154b   :  { %v1322_v63 = vpop.permute.xlu2 %1321 }
0x154c   :  { %v1324_v0 = vsel %vm815_vm4, %v1223_v35, %v1322_v63  ;;  %vm1260_vm4 = vcmask 1041408  }
0x154d   :  { %1326 = vst.msk [vmem:[#allocation15] sm:$0x3] %vm1325_vm11, %v1324_v0  ;;  %v1293_v23 = vsel %vm1260_vm4, %v1251_v20, %v1289_v21 }
0x154e   :  { %1348 = dma.vmem_to_hbm [thread:$0]  %s1344_s21, 32, %s1346_s23, [#allocation16]   ;;  %v1294_v25 = vsel %vm819_vm3, %v1293_v23, %v1291_v22 }
0x1551   :  { %v1037_v5 = vpop.f32.mrf.mxu1 }
0x156b   :  { %v1211_v8 = vpop.f32.mrf.mxu1 }
0x156c   :  { %v1220_v9 = vrot.slane %v1211_v8, 7 }
0x156e   :  { %v1222_v11 = vsel %vm1217_vm15, %v1037_v5, %v1220_v9 }
0x156f   :  { %v1228_v14 = vmul.f32 0.5, %v1222_v11  ;;  %v1255_v15 = vrot.slane %v1222_v11, 6 }
0x1571   :  { %v1229_v16 = vadd.f32 %v1228_v14, %v1227_v12  ;;  %v1261_v18 = vsel %vm1260_vm4, %v1218_v10, %v1255_v15 }
0x1573   :  { %v1258_v17 = vrot.slane %v1229_v16, 4 }
0x1575   :  { %v1262_v19 = vsel %vm819_vm3, %v1261_v18, %v1258_v17 }
0x1576   :  { %1402 = vmatmul.msk.f32.vlgmr.msrb.gmra.mxu3 %vm866_vm5, %v1262_v19 }
0x15f9   :  { %v1285_v24 = vpop.f32.mrf.mxu3 }
0x15fa   :  { %v1295_v26 = vadd.f32 %v1294_v25, %v1285_v24 }
0x15fc   :  { %v1403_v27 = vmul.f32 -1.442695, %v1295_v26 }
0x15fe   :  { %1506 = vpow2.f32 %v1403_v27 }
0x1604   :  { %v1507_v28 = vpop.eup %1506 }
0x1605   :  { %v1299_v29 = vadd.f32 1.0, %v1507_v28 }
0x1607   :  { %1508 = vrcp.f32 %v1299_v29  ;;  %v1311_v32 = vand.u32 2147483648, %v1299_v29  ;;  %v1309_v34 = vand.u32 2147483647, %v1299_v29  ;;  %vm1305_vm13 = vweird.f32 %v1299_v29 }
0x1609   :  { %v1312_v36 = vor.u32 1.1754944e-38, %v1311_v32  ;;  %vm1310_vm15 = vcmp.eq.f32.partialorder %v1309_v34, 8.507059e+37 }
0x160d   :  { %v1509_v30 = vpop.eup %1508 }
0x160e   :  { %v1301_v31 = vmul.f32 %v1509_v30, %v1299_v29  ;;  %vm1306_vm12 = vweird.f32 %v1509_v30 }
0x160f   :  { %vm1307_vm3 = vmor %vm1305_vm13, %vm1306_vm12 }
0x1610   :  { %v1302_v61 = vsub.f32 1.0, %v1301_v31 }
0x1612   :  { %v1303_v33 = vmul.f32 %v1509_v30, %v1302_v61 }
0x1614   :  { %v1304_v35 = vadd.f32 %v1509_v30, %v1303_v33 }
0x1616   :  { %v1308_v38 = vsel %vm1307_vm3, %v1509_v30, %v1304_v35 }
0x1617   :  { %v1313_v39 = vsel %vm1310_vm15, %v1312_v36, %v1308_v38 }
0x1618   :  { %v1318_v40 = vsel %vm1317_vm14, %v1313_v39, %v1315_v37 }
0x1619   :  { %1319 = vst.msk [vmem:[#allocation14] sm:$0xff] %vm866_vm5, %v1318_v40 }
0x161a   :  { %1337 = dma.vmem_to_hbm [thread:$0]  %s1333_s24, 128, %s1335_s12, [#allocation4]  }
0x161b   :  { %1734 = dma.done.wait [#allocation4], 128  }
0x161c   :  { %1735 = vsyncadd [#allocation4], 4294967168 }
0x161d   :  { %1736 = dma.done.wait [#allocation16], 32  }
0x161e   :  { %1737 = vsyncadd [#allocation16], 4294967264 }
0x161f   :  { %1357 = vsyncpa [#allocation3], 1 }
0x1620   :  { %1358 = vsyncpa [#allocation6], 1 }
0x1621   :  { %1359 = vsyncpa [#allocation9], 1 }
0x1622   :  { %1360 = vsyncpa [#allocation12], 1 }
0x1623   :  { %1361 = vsyncpa [#allocation4], 1 }
0x1624   :  { %1362 = vsyncpa [#allocation16], 1 }

</bundles_post_ra>
